<compile_context>
chip_gen: v5e
topology: v5e:2x2
jax: 0.10.0
libtpu: 0.0.40
codegen_flags: <defaults>
</compile_context>

<pallas_src>
import functools

import jax
import jax.numpy as jnp
import numpy as np
from jax.experimental import pallas as pl
from jax.experimental.pallas import tpu as pltpu


# ----------------------------- Pallas kernel --------------------------------
def seq2seq_kernel(T, B,
                   x_ref,                                   # (T*B, I)      bf16
                   wih_e_ref, whh_e_ref,                    # (I,3Hp) (Hp,3Hp) bf16
                   bih_e_ref, bhh_e_ref,                    # (1,3Hp) (1,3Hp)  f32
                   wcat_d_ref, bcat_d_ref,                  # (Hp,6Hp) bf16, (1,6Hp) f32
                   wfc_ref, bfc_ref,                        # (Hp,O) bf16, (1,O) f32
                   out_ref):                                # (B,O)          f32
    Hp = whh_e_ref.shape[0]        # per-gate lane width (128-aligned)
    G = Hp

    # ---- hoist all recurrence-independent work --------------------------------
    # Input projections for every timestep in one batched matmul, bias added once.
    gi_all = (jnp.dot(x_ref[...], wih_e_ref[...],
                      preferred_element_type=jnp.float32)
              + bih_e_ref[...])                             # (T*B, 3Hp) f32

    # Loop-invariant recurrent weight loaded once; recurrent-bias broadcast
    # hoisted once (JAX does not CSE broadcast_in_dim inside the loop).
    whh_e = whh_e_ref[...]                                  # bf16
    bhh_eb = jnp.broadcast_to(bhh_e_ref[...], (B, 3 * G))   # (B, 3Hp) f32

    def gru_gates(gi, gh, h_prev):
        # PyTorch GRU cell, gate order (r, z, n); gi carries b_ih, gh carries b_hh.
        # All slices are whole-vreg (Hp = 128-lane multiple), all math in f32.
        r = jax.nn.sigmoid(gi[:, 0:G] + gh[:, 0:G])
        z = jax.nn.sigmoid(gi[:, G:2 * G] + gh[:, G:2 * G])
        n = jnp.tanh(gi[:, 2 * G:3 * G] + r * gh[:, 2 * G:3 * G])
        return n + z * (h_prev - n)                         # == (1-z)*n + z*h_prev

    # ---- encoder recurrence: ONE matmul per step, fully unrolled (T static) ---
    h = jnp.zeros((B, G), jnp.float32)                      # padded lanes stay 0
    for t in range(T):
        gh = jnp.dot(h.astype(jnp.bfloat16), whh_e,
                     preferred_element_type=jnp.float32) + bhh_eb
        h = gru_gates(gi_all[t * B:(t + 1) * B], gh, h)

    # ---- decoder GRU: single step, fused (W_ih | W_hh) matmul -----------------
    # input = encoder_output[-1] (== h), initial hidden = encoder_hidden (== h).
    gcat = (jnp.dot(h.astype(jnp.bfloat16), wcat_d_ref[...],
                    preferred_element_type=jnp.float32)
            + bcat_d_ref[...])                              # (B, 6Hp)
    h_dec = gru_gates(gcat[:, 0:3 * G], gcat[:, 3 * G:6 * G], h)

    # ---- final Linear ----------------------------------------------------------
    out_ref[...] = (jnp.dot(h_dec.astype(jnp.bfloat16), wfc_ref[...],
                            preferred_element_type=jnp.float32)
                    + bfc_ref[...])


# ------------------------------ Wrapper --------------------------------------
@jax.jit
def seq2seq_forward(x, kp):
    """x: (T, B, I) f32; kp: packed (lane-padded, bf16-weight) params."""
    T, B, I = x.shape
    O = kp["w_fc"].shape[-1]
    x_flat = x.reshape(T * B, I).astype(jnp.bfloat16)   # layout plumbing host/XLA-side
    args = (
        x_flat,
        kp["wih_enc"], kp["whh_enc"], kp["bih_enc"], kp["bhh_enc"],
        kp["wcat_dec"], kp["bcat_dec"],
        kp["w_fc"], kp["b_fc"],
    )
    out = pl.pallas_call(
        functools.partial(seq2seq_kernel, T, B),
        out_shape=jax.ShapeDtypeStruct((B, O), jnp.float32),
        in_specs=[pl.BlockSpec(memory_space=pltpu.MemorySpace.VMEM)] * len(args),
        out_specs=pl.BlockSpec(memory_space=pltpu.MemorySpace.VMEM),
    )(*args)
    return out[None]  # (1, B, O), matching torch: fc(decoder_output)


# --------------------------- Param packing -----------------------------------
def _pad_gates_lanes(w, H, Hp):
    """Gate-stacked (..., 3H) -> (..., 3*Hp): each gate zero-padded to Hp lanes."""
    gates = [w[..., g * H:(g + 1) * H] for g in range(3)]
    pad = [(0, 0)] * (w.ndim - 1) + [(0, Hp - H)]
    return jnp.concatenate([jnp.pad(g, pad) for g in gates], axis=-1)


def _pad_rows(w, H, Hp):
    """(H, N) -> (Hp, N) with zero rows appended."""
    return jnp.pad(w, ((0, Hp - H), (0, 0)))


def pack_params(p):
    """Lane-align gates to Hp=ceil(H/128)*128, fuse decoder weights, cast MXU
    operands to bf16 (biases stay f32 — they are added post-accumulation)."""
    H = p["whh_enc"].shape[0]
    Hp = max(128, -(-H // 128) * 128)
    bf = lambda a: a.astype(jnp.bfloat16)
    wih_d = _pad_rows(_pad_gates_lanes(p["wih_dec"], H, Hp), H, Hp)
    whh_d = _pad_rows(_pad_gates_lanes(p["whh_dec"], H, Hp), H, Hp)
    return {
        "wih_enc": bf(_pad_gates_lanes(p["wih_enc"], H, Hp)),                 # (I, 3Hp)
        "whh_enc": bf(_pad_rows(_pad_gates_lanes(p["whh_enc"], H, Hp), H, Hp)),  # (Hp, 3Hp)
        "bih_enc": _pad_gates_lanes(p["bih_enc"], H, Hp),                     # (1, 3Hp)
        "bhh_enc": _pad_gates_lanes(p["bhh_enc"], H, Hp),                     # (1, 3Hp)
        "wcat_dec": bf(jnp.concatenate([wih_d, whh_d], axis=1)),              # (Hp, 6Hp)
        "bcat_dec": jnp.concatenate([_pad_gates_lanes(p["bih_dec"], H, Hp),
                                     _pad_gates_lanes(p["bhh_dec"], H, Hp)],
                                    axis=1),                                  # (1, 6Hp)
        "w_fc": bf(_pad_rows(p["w_fc"], H, Hp)),                              # (Hp, O)
        "b_fc": p["b_fc"],                                                    # (1, O)
    }


# --------------------------- Pure-JAX reference -------------------------------
def _gru_cell_ref(xv, hv, wih, whh, bih, bhh):
    H = whh.shape[0]
    gi = xv @ wih + bih
    gh = hv @ whh + bhh
    r = jax.nn.sigmoid(gi[:, 0:H] + gh[:, 0:H])
    z = jax.nn.sigmoid(gi[:, H:2 * H] + gh[:, H:2 * H])
    n = jnp.tanh(gi[:, 2 * H:3 * H] + r * gh[:, 2 * H:3 * H])
    return (1.0 - z) * n + z * hv


def seq2seq_ref(x, p):
    T, B, _ = x.shape
    H = p["whh_enc"].shape[0]
    h = jnp.zeros((B, H), jnp.float32)
    for t in range(T):
        h = _gru_cell_ref(x[t], h, p["wih_enc"], p["whh_enc"], p["bih_enc"], p["bhh_enc"])
    h_dec = _gru_cell_ref(h, h, p["wih_dec"], p["whh_dec"], p["bih_dec"], p["bhh_dec"])
    return (h_dec @ p["w_fc"] + p["b_fc"])[None]


# ------------------------------ Params ---------------------------------------
def init_params(key, input_size, hidden_size, output_size):
    """Deterministic init mirroring PyTorch's uniform(-1/sqrt(H), 1/sqrt(H)).

    Unpadded f32 master params, gate-stacked along the last axis with gate
    order (r, z, n), pre-transposed so the math is x @ W directly.
    """
    H, I, O = hidden_size, input_size, output_size
    scale = 1.0 / np.sqrt(H)
    keys = jax.random.split(key, 10)

    def u(k, shape):
        return jax.random.uniform(k, shape, jnp.float32, -scale, scale)

    return {
        # encoder GRU (input_size -> hidden_size)
        "wih_enc": u(keys[0], (I, 3 * H)),
        "whh_enc": u(keys[1], (H, 3 * H)),
        "bih_enc": u(keys[2], (1, 3 * H)),
        "bhh_enc": u(keys[3], (1, 3 * H)),
        # decoder GRU (hidden_size -> hidden_size)
        "wih_dec": u(keys[4], (H, 3 * H)),
        "whh_dec": u(keys[5], (H, 3 * H)),
        "bih_dec": u(keys[6], (1, 3 * H)),
        "bhh_dec": u(keys[7], (1, 3 * H)),
        # fc (hidden_size -> output_size)
        "w_fc": u(keys[8], (H, O)),
        "b_fc": u(keys[9], (1, O)),
    }


# ------------------------------- Main -----------------------------------------
if __name__ == "__main__":
    # small shapes consistent with the module's (seq, batch, input_size) GRU input
    T, B = 8, 8
    input_size, hidden_size, output_size = 32, 32, 32

    key = jax.random.PRNGKey(0)
    k_param, k_x = jax.random.split(key)
    params = init_params(k_param, input_size, hidden_size, output_size)
    kernel_params = pack_params(params)
    source = jax.random.normal(k_x, (T, B, input_size), jnp.float32)

    out = seq2seq_forward(source, kernel_params)
    out = jax.block_until_ready(out)

    ref = seq2seq_ref(source, params)  # f32 reference (PyTorch semantics)
    # Tolerance widened vs the pure-f32 kernel because MXU operands are bf16
    # (f32 accumulation); gate math is still f32.
    np.testing.assert_allclose(np.asarray(out), np.asarray(ref), rtol=2e-2, atol=2e-2)
    assert out.shape == (1, B, output_size)

    print("KERNEL_OK")
</pallas_src>

<mosaic_0001>
module attributes {stable_mosaic.version = 11 : i64} {
  func.func @seq2seq_kernel(%arg0: memref<64x32xbf16, #tpu.memory_space<vmem>>, %arg1: memref<32x384xbf16, #tpu.memory_space<vmem>>, %arg2: memref<128x384xbf16, #tpu.memory_space<vmem>>, %arg3: memref<1x384xf32, #tpu.memory_space<vmem>>, %arg4: memref<1x384xf32, #tpu.memory_space<vmem>>, %arg5: memref<128x768xbf16, #tpu.memory_space<vmem>>, %arg6: memref<1x768xf32, #tpu.memory_space<vmem>>, %arg7: memref<128x32xbf16, #tpu.memory_space<vmem>>, %arg8: memref<1x32xf32, #tpu.memory_space<vmem>>, %arg9: memref<8x32xf32, #tpu.memory_space<vmem>>) attributes {dimension_semantics = [], scalar_prefetch = 0 : i64, scratch_operands = 0 : i64, tpu.core_type = #tpu.core_type<tc>} {
    %c0 = arith.constant 0 : index
    %c0_0 = arith.constant 0 : index
    %0 = vector.load %arg0[%c0, %c0_0] : memref<64x32xbf16, #tpu.memory_space<vmem>>, vector<64x32xbf16>
    %c0_1 = arith.constant 0 : index
    %c0_2 = arith.constant 0 : index
    %1 = vector.load %arg1[%c0_1, %c0_2] : memref<32x384xbf16, #tpu.memory_space<vmem>>, vector<32x384xbf16>
    %cst = arith.constant dense<0.000000e+00> : vector<64x384xf32>
    %2 = tpu.matmul %0, %1, %cst {dimension_numbers = #tpu.dot_dimension_numbers<[1], [0], [0], [1], [0, 0, 1, 1], [], []>} : vector<64x32xbf16>, vector<32x384xbf16>, vector<64x384xf32> -> vector<64x384xf32>
    %c0_3 = arith.constant 0 : index
    %c0_4 = arith.constant 0 : index
    %3 = vector.load %arg3[%c0_3, %c0_4] : memref<1x384xf32, #tpu.memory_space<vmem>>, vector<1x384xf32>
    %4 = vector.broadcast %3 : vector<1x384xf32> to vector<64x384xf32>
    %5 = arith.addf %2, %4 : vector<64x384xf32>
    %c0_5 = arith.constant 0 : index
    %c0_6 = arith.constant 0 : index
    %6 = vector.load %arg2[%c0_5, %c0_6] : memref<128x384xbf16, #tpu.memory_space<vmem>>, vector<128x384xbf16>
    %c0_7 = arith.constant 0 : index
    %c0_8 = arith.constant 0 : index
    %7 = vector.load %arg4[%c0_7, %c0_8] : memref<1x384xf32, #tpu.memory_space<vmem>>, vector<1x384xf32>
    %8 = vector.shape_cast %7 : vector<1x384xf32> to vector<1x384xf32>
    %9 = vector.broadcast %8 : vector<1x384xf32> to vector<8x384xf32>
    %cst_9 = arith.constant 0.000000e+00 : f32
    %10 = vector.broadcast %cst_9 : f32 to vector<8x128xf32>
    %11 = arith.truncf %10 : vector<8x128xf32> to vector<8x128xbf16>
    %cst_10 = arith.constant dense<0.000000e+00> : vector<8x384xf32>
    %12 = tpu.matmul %11, %6, %cst_10 {dimension_numbers = #tpu.dot_dimension_numbers<[1], [0], [0], [1], [0, 0, 1, 1], [], []>} : vector<8x128xbf16>, vector<128x384xbf16>, vector<8x384xf32> -> vector<8x384xf32>
    %13 = arith.addf %12, %9 : vector<8x384xf32>
    %14 = vector.extract_strided_slice %5 {offsets = [0, 0], sizes = [8, 384], strides = [1, 1]} : vector<64x384xf32> to vector<8x384xf32>
    %15 = vector.extract_strided_slice %14 {offsets = [0, 0], sizes = [8, 128], strides = [1, 1]} : vector<8x384xf32> to vector<8x128xf32>
    %16 = vector.extract_strided_slice %13 {offsets = [0, 0], sizes = [8, 128], strides = [1, 1]} : vector<8x384xf32> to vector<8x128xf32>
    %17 = arith.addf %15, %16 : vector<8x128xf32>
    %18 = arith.negf %17 : vector<8x128xf32>
    %19 = math.exp %18 : vector<8x128xf32>
    %cst_11 = arith.constant 1.000000e+00 : f32
    %20 = vector.broadcast %cst_11 : f32 to vector<8x128xf32>
    %21 = arith.addf %20, %19 : vector<8x128xf32>
    %22 = arith.divf %20, %21 : vector<8x128xf32>
    %23 = vector.extract_strided_slice %14 {offsets = [0, 128], sizes = [8, 128], strides = [1, 1]} : vector<8x384xf32> to vector<8x128xf32>
    %24 = vector.extract_strided_slice %13 {offsets = [0, 128], sizes = [8, 128], strides = [1, 1]} : vector<8x384xf32> to vector<8x128xf32>
    %25 = arith.addf %23, %24 : vector<8x128xf32>
    %26 = arith.negf %25 : vector<8x128xf32>
    %27 = math.exp %26 : vector<8x128xf32>
    %cst_12 = arith.constant 1.000000e+00 : f32
    %28 = vector.broadcast %cst_12 : f32 to vector<8x128xf32>
    %29 = arith.addf %28, %27 : vector<8x128xf32>
    %30 = arith.divf %28, %29 : vector<8x128xf32>
    %31 = vector.extract_strided_slice %14 {offsets = [0, 256], sizes = [8, 128], strides = [1, 1]} : vector<8x384xf32> to vector<8x128xf32>
    %32 = vector.extract_strided_slice %13 {offsets = [0, 256], sizes = [8, 128], strides = [1, 1]} : vector<8x384xf32> to vector<8x128xf32>
    %33 = arith.mulf %22, %32 : vector<8x128xf32>
    %34 = arith.addf %31, %33 : vector<8x128xf32>
    %35 = math.tanh %34 : vector<8x128xf32>
    %36 = arith.subf %10, %35 : vector<8x128xf32>
    %37 = arith.mulf %30, %36 : vector<8x128xf32>
    %38 = arith.addf %35, %37 : vector<8x128xf32>
    %39 = arith.truncf %38 : vector<8x128xf32> to vector<8x128xbf16>
    %cst_13 = arith.constant dense<0.000000e+00> : vector<8x384xf32>
    %40 = tpu.matmul %39, %6, %cst_13 {dimension_numbers = #tpu.dot_dimension_numbers<[1], [0], [0], [1], [0, 0, 1, 1], [], []>} : vector<8x128xbf16>, vector<128x384xbf16>, vector<8x384xf32> -> vector<8x384xf32>
    %41 = arith.addf %40, %9 : vector<8x384xf32>
    %42 = vector.extract_strided_slice %5 {offsets = [8, 0], sizes = [8, 384], strides = [1, 1]} : vector<64x384xf32> to vector<8x384xf32>
    %43 = vector.extract_strided_slice %42 {offsets = [0, 0], sizes = [8, 128], strides = [1, 1]} : vector<8x384xf32> to vector<8x128xf32>
    %44 = vector.extract_strided_slice %41 {offsets = [0, 0], sizes = [8, 128], strides = [1, 1]} : vector<8x384xf32> to vector<8x128xf32>
    %45 = arith.addf %43, %44 : vector<8x128xf32>
    %46 = arith.negf %45 : vector<8x128xf32>
    %47 = math.exp %46 : vector<8x128xf32>
    %cst_14 = arith.constant 1.000000e+00 : f32
    %48 = vector.broadcast %cst_14 : f32 to vector<8x128xf32>
    %49 = arith.addf %48, %47 : vector<8x128xf32>
    %50 = arith.divf %48, %49 : vector<8x128xf32>
    %51 = vector.extract_strided_slice %42 {offsets = [0, 128], sizes = [8, 128], strides = [1, 1]} : vector<8x384xf32> to vector<8x128xf32>
    %52 = vector.extract_strided_slice %41 {offsets = [0, 128], sizes = [8, 128], strides = [1, 1]} : vector<8x384xf32> to vector<8x128xf32>
    %53 = arith.addf %51, %52 : vector<8x128xf32>
    %54 = arith.negf %53 : vector<8x128xf32>
    %55 = math.exp %54 : vector<8x128xf32>
    %cst_15 = arith.constant 1.000000e+00 : f32
    %56 = vector.broadcast %cst_15 : f32 to vector<8x128xf32>
    %57 = arith.addf %56, %55 : vector<8x128xf32>
    %58 = arith.divf %56, %57 : vector<8x128xf32>
    %59 = vector.extract_strided_slice %42 {offsets = [0, 256], sizes = [8, 128], strides = [1, 1]} : vector<8x384xf32> to vector<8x128xf32>
    %60 = vector.extract_strided_slice %41 {offsets = [0, 256], sizes = [8, 128], strides = [1, 1]} : vector<8x384xf32> to vector<8x128xf32>
    %61 = arith.mulf %50, %60 : vector<8x128xf32>
    %62 = arith.addf %59, %61 : vector<8x128xf32>
    %63 = math.tanh %62 : vector<8x128xf32>
    %64 = arith.subf %38, %63 : vector<8x128xf32>
    %65 = arith.mulf %58, %64 : vector<8x128xf32>
    %66 = arith.addf %63, %65 : vector<8x128xf32>
    %67 = arith.truncf %66 : vector<8x128xf32> to vector<8x128xbf16>
    %cst_16 = arith.constant dense<0.000000e+00> : vector<8x384xf32>
    %68 = tpu.matmul %67, %6, %cst_16 {dimension_numbers = #tpu.dot_dimension_numbers<[1], [0], [0], [1], [0, 0, 1, 1], [], []>} : vector<8x128xbf16>, vector<128x384xbf16>, vector<8x384xf32> -> vector<8x384xf32>
    %69 = arith.addf %68, %9 : vector<8x384xf32>
    %70 = vector.extract_strided_slice %5 {offsets = [16, 0], sizes = [8, 384], strides = [1, 1]} : vector<64x384xf32> to vector<8x384xf32>
    %71 = vector.extract_strided_slice %70 {offsets = [0, 0], sizes = [8, 128], strides = [1, 1]} : vector<8x384xf32> to vector<8x128xf32>
    %72 = vector.extract_strided_slice %69 {offsets = [0, 0], sizes = [8, 128], strides = [1, 1]} : vector<8x384xf32> to vector<8x128xf32>
    %73 = arith.addf %71, %72 : vector<8x128xf32>
    %74 = arith.negf %73 : vector<8x128xf32>
    %75 = math.exp %74 : vector<8x128xf32>
    %cst_17 = arith.constant 1.000000e+00 : f32
    %76 = vector.broadcast %cst_17 : f32 to vector<8x128xf32>
    %77 = arith.addf %76, %75 : vector<8x128xf32>
    %78 = arith.divf %76, %77 : vector<8x128xf32>
    %79 = vector.extract_strided_slice %70 {offsets = [0, 128], sizes = [8, 128], strides = [1, 1]} : vector<8x384xf32> to vector<8x128xf32>
    %80 = vector.extract_strided_slice %69 {offsets = [0, 128], sizes = [8, 128], strides = [1, 1]} : vector<8x384xf32> to vector<8x128xf32>
    %81 = arith.addf %79, %80 : vector<8x128xf32>
    %82 = arith.negf %81 : vector<8x128xf32>
    %83 = math.exp %82 : vector<8x128xf32>
    %cst_18 = arith.constant 1.000000e+00 : f32
    %84 = vector.broadcast %cst_18 : f32 to vector<8x128xf32>
    %85 = arith.addf %84, %83 : vector<8x128xf32>
    %86 = arith.divf %84, %85 : vector<8x128xf32>
    %87 = vector.extract_strided_slice %70 {offsets = [0, 256], sizes = [8, 128], strides = [1, 1]} : vector<8x384xf32> to vector<8x128xf32>
    %88 = vector.extract_strided_slice %69 {offsets = [0, 256], sizes = [8, 128], strides = [1, 1]} : vector<8x384xf32> to vector<8x128xf32>
    %89 = arith.mulf %78, %88 : vector<8x128xf32>
    %90 = arith.addf %87, %89 : vector<8x128xf32>
    %91 = math.tanh %90 : vector<8x128xf32>
    %92 = arith.subf %66, %91 : vector<8x128xf32>
    %93 = arith.mulf %86, %92 : vector<8x128xf32>
    %94 = arith.addf %91, %93 : vector<8x128xf32>
    %95 = arith.truncf %94 : vector<8x128xf32> to vector<8x128xbf16>
    %cst_19 = arith.constant dense<0.000000e+00> : vector<8x384xf32>
    %96 = tpu.matmul %95, %6, %cst_19 {dimension_numbers = #tpu.dot_dimension_numbers<[1], [0], [0], [1], [0, 0, 1, 1], [], []>} : vector<8x128xbf16>, vector<128x384xbf16>, vector<8x384xf32> -> vector<8x384xf32>
    %97 = arith.addf %96, %9 : vector<8x384xf32>
    %98 = vector.extract_strided_slice %5 {offsets = [24, 0], sizes = [8, 384], strides = [1, 1]} : vector<64x384xf32> to vector<8x384xf32>
    %99 = vector.extract_strided_slice %98 {offsets = [0, 0], sizes = [8, 128], strides = [1, 1]} : vector<8x384xf32> to vector<8x128xf32>
    %100 = vector.extract_strided_slice %97 {offsets = [0, 0], sizes = [8, 128], strides = [1, 1]} : vector<8x384xf32> to vector<8x128xf32>
    %101 = arith.addf %99, %100 : vector<8x128xf32>
    %102 = arith.negf %101 : vector<8x128xf32>
    %103 = math.exp %102 : vector<8x128xf32>
    %cst_20 = arith.constant 1.000000e+00 : f32
    %104 = vector.broadcast %cst_20 : f32 to vector<8x128xf32>
    %105 = arith.addf %104, %103 : vector<8x128xf32>
    %106 = arith.divf %104, %105 : vector<8x128xf32>
    %107 = vector.extract_strided_slice %98 {offsets = [0, 128], sizes = [8, 128], strides = [1, 1]} : vector<8x384xf32> to vector<8x128xf32>
    %108 = vector.extract_strided_slice %97 {offsets = [0, 128], sizes = [8, 128], strides = [1, 1]} : vector<8x384xf32> to vector<8x128xf32>
    %109 = arith.addf %107, %108 : vector<8x128xf32>
    %110 = arith.negf %109 : vector<8x128xf32>
    %111 = math.exp %110 : vector<8x128xf32>
    %cst_21 = arith.constant 1.000000e+00 : f32
    %112 = vector.broadcast %cst_21 : f32 to vector<8x128xf32>
    %113 = arith.addf %112, %111 : vector<8x128xf32>
    %114 = arith.divf %112, %113 : vector<8x128xf32>
    %115 = vector.extract_strided_slice %98 {offsets = [0, 256], sizes = [8, 128], strides = [1, 1]} : vector<8x384xf32> to vector<8x128xf32>
    %116 = vector.extract_strided_slice %97 {offsets = [0, 256], sizes = [8, 128], strides = [1, 1]} : vector<8x384xf32> to vector<8x128xf32>
    %117 = arith.mulf %106, %116 : vector<8x128xf32>
    %118 = arith.addf %115, %117 : vector<8x128xf32>
    %119 = math.tanh %118 : vector<8x128xf32>
    %120 = arith.subf %94, %119 : vector<8x128xf32>
    %121 = arith.mulf %114, %120 : vector<8x128xf32>
    %122 = arith.addf %119, %121 : vector<8x128xf32>
    %123 = arith.truncf %122 : vector<8x128xf32> to vector<8x128xbf16>
    %cst_22 = arith.constant dense<0.000000e+00> : vector<8x384xf32>
    %124 = tpu.matmul %123, %6, %cst_22 {dimension_numbers = #tpu.dot_dimension_numbers<[1], [0], [0], [1], [0, 0, 1, 1], [], []>} : vector<8x128xbf16>, vector<128x384xbf16>, vector<8x384xf32> -> vector<8x384xf32>
    %125 = arith.addf %124, %9 : vector<8x384xf32>
    %126 = vector.extract_strided_slice %5 {offsets = [32, 0], sizes = [8, 384], strides = [1, 1]} : vector<64x384xf32> to vector<8x384xf32>
    %127 = vector.extract_strided_slice %126 {offsets = [0, 0], sizes = [8, 128], strides = [1, 1]} : vector<8x384xf32> to vector<8x128xf32>
    %128 = vector.extract_strided_slice %125 {offsets = [0, 0], sizes = [8, 128], strides = [1, 1]} : vector<8x384xf32> to vector<8x128xf32>
    %129 = arith.addf %127, %128 : vector<8x128xf32>
    %130 = arith.negf %129 : vector<8x128xf32>
    %131 = math.exp %130 : vector<8x128xf32>
    %cst_23 = arith.constant 1.000000e+00 : f32
    %132 = vector.broadcast %cst_23 : f32 to vector<8x128xf32>
    %133 = arith.addf %132, %131 : vector<8x128xf32>
    %134 = arith.divf %132, %133 : vector<8x128xf32>
    %135 = vector.extract_strided_slice %126 {offsets = [0, 128], sizes = [8, 128], strides = [1, 1]} : vector<8x384xf32> to vector<8x128xf32>
    %136 = vector.extract_strided_slice %125 {offsets = [0, 128], sizes = [8, 128], strides = [1, 1]} : vector<8x384xf32> to vector<8x128xf32>
    %137 = arith.addf %135, %136 : vector<8x128xf32>
    %138 = arith.negf %137 : vector<8x128xf32>
    %139 = math.exp %138 : vector<8x128xf32>
    %cst_24 = arith.constant 1.000000e+00 : f32
    %140 = vector.broadcast %cst_24 : f32 to vector<8x128xf32>
    %141 = arith.addf %140, %139 : vector<8x128xf32>
    %142 = arith.divf %140, %141 : vector<8x128xf32>
    %143 = vector.extract_strided_slice %126 {offsets = [0, 256], sizes = [8, 128], strides = [1, 1]} : vector<8x384xf32> to vector<8x128xf32>
    %144 = vector.extract_strided_slice %125 {offsets = [0, 256], sizes = [8, 128], strides = [1, 1]} : vector<8x384xf32> to vector<8x128xf32>
    %145 = arith.mulf %134, %144 : vector<8x128xf32>
    %146 = arith.addf %143, %145 : vector<8x128xf32>
    %147 = math.tanh %146 : vector<8x128xf32>
    %148 = arith.subf %122, %147 : vector<8x128xf32>
    %149 = arith.mulf %142, %148 : vector<8x128xf32>
    %150 = arith.addf %147, %149 : vector<8x128xf32>
    %151 = arith.truncf %150 : vector<8x128xf32> to vector<8x128xbf16>
    %cst_25 = arith.constant dense<0.000000e+00> : vector<8x384xf32>
    %152 = tpu.matmul %151, %6, %cst_25 {dimension_numbers = #tpu.dot_dimension_numbers<[1], [0], [0], [1], [0, 0, 1, 1], [], []>} : vector<8x128xbf16>, vector<128x384xbf16>, vector<8x384xf32> -> vector<8x384xf32>
    %153 = arith.addf %152, %9 : vector<8x384xf32>
    %154 = vector.extract_strided_slice %5 {offsets = [40, 0], sizes = [8, 384], strides = [1, 1]} : vector<64x384xf32> to vector<8x384xf32>
    %155 = vector.extract_strided_slice %154 {offsets = [0, 0], sizes = [8, 128], strides = [1, 1]} : vector<8x384xf32> to vector<8x128xf32>
    %156 = vector.extract_strided_slice %153 {offsets = [0, 0], sizes = [8, 128], strides = [1, 1]} : vector<8x384xf32> to vector<8x128xf32>
    %157 = arith.addf %155, %156 : vector<8x128xf32>
    %158 = arith.negf %157 : vector<8x128xf32>
    %159 = math.exp %158 : vector<8x128xf32>
    %cst_26 = arith.constant 1.000000e+00 : f32
    %160 = vector.broadcast %cst_26 : f32 to vector<8x128xf32>
    %161 = arith.addf %160, %159 : vector<8x128xf32>
    %162 = arith.divf %160, %161 : vector<8x128xf32>
    %163 = vector.extract_strided_slice %154 {offsets = [0, 128], sizes = [8, 128], strides = [1, 1]} : vector<8x384xf32> to vector<8x128xf32>
    %164 = vector.extract_strided_slice %153 {offsets = [0, 128], sizes = [8, 128], strides = [1, 1]} : vector<8x384xf32> to vector<8x128xf32>
    %165 = arith.addf %163, %164 : vector<8x128xf32>
    %166 = arith.negf %165 : vector<8x128xf32>
    %167 = math.exp %166 : vector<8x128xf32>
    %cst_27 = arith.constant 1.000000e+00 : f32
    %168 = vector.broadcast %cst_27 : f32 to vector<8x128xf32>
    %169 = arith.addf %168, %167 : vector<8x128xf32>
    %170 = arith.divf %168, %169 : vector<8x128xf32>
    %171 = vector.extract_strided_slice %154 {offsets = [0, 256], sizes = [8, 128], strides = [1, 1]} : vector<8x384xf32> to vector<8x128xf32>
    %172 = vector.extract_strided_slice %153 {offsets = [0, 256], sizes = [8, 128], strides = [1, 1]} : vector<8x384xf32> to vector<8x128xf32>
    %173 = arith.mulf %162, %172 : vector<8x128xf32>
    %174 = arith.addf %171, %173 : vector<8x128xf32>
    %175 = math.tanh %174 : vector<8x128xf32>
    %176 = arith.subf %150, %175 : vector<8x128xf32>
    %177 = arith.mulf %170, %176 : vector<8x128xf32>
    %178 = arith.addf %175, %177 : vector<8x128xf32>
    %179 = arith.truncf %178 : vector<8x128xf32> to vector<8x128xbf16>
    %cst_28 = arith.constant dense<0.000000e+00> : vector<8x384xf32>
    %180 = tpu.matmul %179, %6, %cst_28 {dimension_numbers = #tpu.dot_dimension_numbers<[1], [0], [0], [1], [0, 0, 1, 1], [], []>} : vector<8x128xbf16>, vector<128x384xbf16>, vector<8x384xf32> -> vector<8x384xf32>
    %181 = arith.addf %180, %9 : vector<8x384xf32>
    %182 = vector.extract_strided_slice %5 {offsets = [48, 0], sizes = [8, 384], strides = [1, 1]} : vector<64x384xf32> to vector<8x384xf32>
    %183 = vector.extract_strided_slice %182 {offsets = [0, 0], sizes = [8, 128], strides = [1, 1]} : vector<8x384xf32> to vector<8x128xf32>
    %184 = vector.extract_strided_slice %181 {offsets = [0, 0], sizes = [8, 128], strides = [1, 1]} : vector<8x384xf32> to vector<8x128xf32>
    %185 = arith.addf %183, %184 : vector<8x128xf32>
    %186 = arith.negf %185 : vector<8x128xf32>
    %187 = math.exp %186 : vector<8x128xf32>
    %cst_29 = arith.constant 1.000000e+00 : f32
    %188 = vector.broadcast %cst_29 : f32 to vector<8x128xf32>
    %189 = arith.addf %188, %187 : vector<8x128xf32>
    %190 = arith.divf %188, %189 : vector<8x128xf32>
    %191 = vector.extract_strided_slice %182 {offsets = [0, 128], sizes = [8, 128], strides = [1, 1]} : vector<8x384xf32> to vector<8x128xf32>
    %192 = vector.extract_strided_slice %181 {offsets = [0, 128], sizes = [8, 128], strides = [1, 1]} : vector<8x384xf32> to vector<8x128xf32>
    %193 = arith.addf %191, %192 : vector<8x128xf32>
    %194 = arith.negf %193 : vector<8x128xf32>
    %195 = math.exp %194 : vector<8x128xf32>
    %cst_30 = arith.constant 1.000000e+00 : f32
    %196 = vector.broadcast %cst_30 : f32 to vector<8x128xf32>
    %197 = arith.addf %196, %195 : vector<8x128xf32>
    %198 = arith.divf %196, %197 : vector<8x128xf32>
    %199 = vector.extract_strided_slice %182 {offsets = [0, 256], sizes = [8, 128], strides = [1, 1]} : vector<8x384xf32> to vector<8x128xf32>
    %200 = vector.extract_strided_slice %181 {offsets = [0, 256], sizes = [8, 128], strides = [1, 1]} : vector<8x384xf32> to vector<8x128xf32>
    %201 = arith.mulf %190, %200 : vector<8x128xf32>
    %202 = arith.addf %199, %201 : vector<8x128xf32>
    %203 = math.tanh %202 : vector<8x128xf32>
    %204 = arith.subf %178, %203 : vector<8x128xf32>
    %205 = arith.mulf %198, %204 : vector<8x128xf32>
    %206 = arith.addf %203, %205 : vector<8x128xf32>
    %207 = arith.truncf %206 : vector<8x128xf32> to vector<8x128xbf16>
    %cst_31 = arith.constant dense<0.000000e+00> : vector<8x384xf32>
    %208 = tpu.matmul %207, %6, %cst_31 {dimension_numbers = #tpu.dot_dimension_numbers<[1], [0], [0], [1], [0, 0, 1, 1], [], []>} : vector<8x128xbf16>, vector<128x384xbf16>, vector<8x384xf32> -> vector<8x384xf32>
    %209 = arith.addf %208, %9 : vector<8x384xf32>
    %210 = vector.extract_strided_slice %5 {offsets = [56, 0], sizes = [8, 384], strides = [1, 1]} : vector<64x384xf32> to vector<8x384xf32>
    %211 = vector.extract_strided_slice %210 {offsets = [0, 0], sizes = [8, 128], strides = [1, 1]} : vector<8x384xf32> to vector<8x128xf32>
    %212 = vector.extract_strided_slice %209 {offsets = [0, 0], sizes = [8, 128], strides = [1, 1]} : vector<8x384xf32> to vector<8x128xf32>
    %213 = arith.addf %211, %212 : vector<8x128xf32>
    %214 = arith.negf %213 : vector<8x128xf32>
    %215 = math.exp %214 : vector<8x128xf32>
    %cst_32 = arith.constant 1.000000e+00 : f32
    %216 = vector.broadcast %cst_32 : f32 to vector<8x128xf32>
    %217 = arith.addf %216, %215 : vector<8x128xf32>
    %218 = arith.divf %216, %217 : vector<8x128xf32>
    %219 = vector.extract_strided_slice %210 {offsets = [0, 128], sizes = [8, 128], strides = [1, 1]} : vector<8x384xf32> to vector<8x128xf32>
    %220 = vector.extract_strided_slice %209 {offsets = [0, 128], sizes = [8, 128], strides = [1, 1]} : vector<8x384xf32> to vector<8x128xf32>
    %221 = arith.addf %219, %220 : vector<8x128xf32>
    %222 = arith.negf %221 : vector<8x128xf32>
    %223 = math.exp %222 : vector<8x128xf32>
    %cst_33 = arith.constant 1.000000e+00 : f32
    %224 = vector.broadcast %cst_33 : f32 to vector<8x128xf32>
    %225 = arith.addf %224, %223 : vector<8x128xf32>
    %226 = arith.divf %224, %225 : vector<8x128xf32>
    %227 = vector.extract_strided_slice %210 {offsets = [0, 256], sizes = [8, 128], strides = [1, 1]} : vector<8x384xf32> to vector<8x128xf32>
    %228 = vector.extract_strided_slice %209 {offsets = [0, 256], sizes = [8, 128], strides = [1, 1]} : vector<8x384xf32> to vector<8x128xf32>
    %229 = arith.mulf %218, %228 : vector<8x128xf32>
    %230 = arith.addf %227, %229 : vector<8x128xf32>
    %231 = math.tanh %230 : vector<8x128xf32>
    %232 = arith.subf %206, %231 : vector<8x128xf32>
    %233 = arith.mulf %226, %232 : vector<8x128xf32>
    %234 = arith.addf %231, %233 : vector<8x128xf32>
    %235 = arith.truncf %234 : vector<8x128xf32> to vector<8x128xbf16>
    %c0_34 = arith.constant 0 : index
    %c0_35 = arith.constant 0 : index
    %236 = vector.load %arg5[%c0_34, %c0_35] : memref<128x768xbf16, #tpu.memory_space<vmem>>, vector<128x768xbf16>
    %cst_36 = arith.constant dense<0.000000e+00> : vector<8x768xf32>
    %237 = tpu.matmul %235, %236, %cst_36 {dimension_numbers = #tpu.dot_dimension_numbers<[1], [0], [0], [1], [0, 0, 1, 1], [], []>} : vector<8x128xbf16>, vector<128x768xbf16>, vector<8x768xf32> -> vector<8x768xf32>
    %c0_37 = arith.constant 0 : index
    %c0_38 = arith.constant 0 : index
    %238 = vector.load %arg6[%c0_37, %c0_38] : memref<1x768xf32, #tpu.memory_space<vmem>>, vector<1x768xf32>
    %239 = vector.broadcast %238 : vector<1x768xf32> to vector<8x768xf32>
    %240 = arith.addf %237, %239 : vector<8x768xf32>
    %241 = vector.extract_strided_slice %240 {offsets = [0, 0], sizes = [8, 384], strides = [1, 1]} : vector<8x768xf32> to vector<8x384xf32>
    %242 = vector.extract_strided_slice %240 {offsets = [0, 384], sizes = [8, 384], strides = [1, 1]} : vector<8x768xf32> to vector<8x384xf32>
    %243 = vector.extract_strided_slice %241 {offsets = [0, 0], sizes = [8, 128], strides = [1, 1]} : vector<8x384xf32> to vector<8x128xf32>
    %244 = vector.extract_strided_slice %242 {offsets = [0, 0], sizes = [8, 128], strides = [1, 1]} : vector<8x384xf32> to vector<8x128xf32>
    %245 = arith.addf %243, %244 : vector<8x128xf32>
    %246 = arith.negf %245 : vector<8x128xf32>
    %247 = math.exp %246 : vector<8x128xf32>
    %cst_39 = arith.constant 1.000000e+00 : f32
    %248 = vector.broadcast %cst_39 : f32 to vector<8x128xf32>
    %249 = arith.addf %248, %247 : vector<8x128xf32>
    %250 = arith.divf %248, %249 : vector<8x128xf32>
    %251 = vector.extract_strided_slice %241 {offsets = [0, 128], sizes = [8, 128], strides = [1, 1]} : vector<8x384xf32> to vector<8x128xf32>
    %252 = vector.extract_strided_slice %242 {offsets = [0, 128], sizes = [8, 128], strides = [1, 1]} : vector<8x384xf32> to vector<8x128xf32>
    %253 = arith.addf %251, %252 : vector<8x128xf32>
    %254 = arith.negf %253 : vector<8x128xf32>
    %255 = math.exp %254 : vector<8x128xf32>
    %cst_40 = arith.constant 1.000000e+00 : f32
    %256 = vector.broadcast %cst_40 : f32 to vector<8x128xf32>
    %257 = arith.addf %256, %255 : vector<8x128xf32>
    %258 = arith.divf %256, %257 : vector<8x128xf32>
    %259 = vector.extract_strided_slice %241 {offsets = [0, 256], sizes = [8, 128], strides = [1, 1]} : vector<8x384xf32> to vector<8x128xf32>
    %260 = vector.extract_strided_slice %242 {offsets = [0, 256], sizes = [8, 128], strides = [1, 1]} : vector<8x384xf32> to vector<8x128xf32>
    %261 = arith.mulf %250, %260 : vector<8x128xf32>
    %262 = arith.addf %259, %261 : vector<8x128xf32>
    %263 = math.tanh %262 : vector<8x128xf32>
    %264 = arith.subf %234, %263 : vector<8x128xf32>
    %265 = arith.mulf %258, %264 : vector<8x128xf32>
    %266 = arith.addf %263, %265 : vector<8x128xf32>
    %267 = arith.truncf %266 : vector<8x128xf32> to vector<8x128xbf16>
    %c0_41 = arith.constant 0 : index
    %c0_42 = arith.constant 0 : index
    %268 = vector.load %arg7[%c0_41, %c0_42] : memref<128x32xbf16, #tpu.memory_space<vmem>>, vector<128x32xbf16>
    %cst_43 = arith.constant dense<0.000000e+00> : vector<8x32xf32>
    %269 = tpu.matmul %267, %268, %cst_43 {dimension_numbers = #tpu.dot_dimension_numbers<[1], [0], [0], [1], [0, 0, 1, 1], [], []>} : vector<8x128xbf16>, vector<128x32xbf16>, vector<8x32xf32> -> vector<8x32xf32>
    %c0_44 = arith.constant 0 : index
    %c0_45 = arith.constant 0 : index
    %270 = vector.load %arg8[%c0_44, %c0_45] : memref<1x32xf32, #tpu.memory_space<vmem>>, vector<1x32xf32>
    %271 = vector.broadcast %270 : vector<1x32xf32> to vector<8x32xf32>
    %272 = arith.addf %269, %271 : vector<8x32xf32>
    %c0_46 = arith.constant 0 : index
    %c0_47 = arith.constant 0 : index
    %273 = vector.load %arg9[%c0_46, %c0_47] : memref<8x32xf32, #tpu.memory_space<vmem>>, vector<8x32xf32>
    tpu.vector_store %arg9[%c0_46, %c0_47], %272 {strides = array<i32>} : memref<8x32xf32, #tpu.memory_space<vmem>>, vector<8x32xf32>,
    return
  }
}

</mosaic_0001>

<bundles_post_ra>
// kernel: seq2seq_forward.1
= control target key start
LH: loop header
LB: loop body
LE: loop exit
PB: predicated region body
PF: predicated region fallthrough
CT: control target
= control target key end

     0   :  { %14 = vsyncpa [#allocation3], 0  ;;  %s2873_s0 = inlined_call_operand.vmem [shape: bf16[64,32], index: 0, kind: input, shape index: {}]   ;;  %s2874_s1 = inlined_call_operand.vmem [shape: bf16[32,384], index: 1, kind: input, shape index: {}]   ;;  %s2875_s2 = inlined_call_operand.hbm [shape: bf16[128,384], index: 2, kind: input, shape index: {}]   ;;  %s2876_s3 = inlined_call_operand.vmem [shape: f32[1,384], index: 3, kind: input, shape index: {}]   ;;  %s2877_s4 = inlined_call_operand.vmem [shape: f32[1,384], index: 4, kind: input, shape index: {}]   ;;  %s2878_s5 = inlined_call_operand.hbm [shape: bf16[128,768], index: 5, kind: input, shape index: {}]   ;;  %s2879_s6 = inlined_call_operand.vmem [shape: f32[1,768], index: 6, kind: input, shape index: {}]   ;;  %s2880_s7 = inlined_call_operand.vmem [shape: bf16[128,32], index: 7, kind: input, shape index: {}]   ;;  %s2881_s8 = inlined_call_operand.vmem [shape: f32[1,32], index: 8, kind: input, shape index: {}]   ;;  %s2882_s9 = inlined_call_operand.hbm [shape: f32[8,32], index: 9, kind: output, shape index: {}]  }
   0x1   :  { %15 = vsyncpa [#allocation6], 0 }
   0x2   :  { %16 = vsyncpa [#allocation4], 0  ;;  %s25_s11 = sshll.u32 %s2875_s2, 4  ;;  %s2284_s12 = smov [#allocation2]   ;;  %s26_s11 = int_to_ptr.hbm [resolvable:$true] %s25_s11 }
   0x3   :  { %s27_s13 = sshll.u32 %s2284_s12, 4  ;;  %s42_s16 = sshll.u32 %s2878_s5, 4  ;;  %s28_s13 = int_to_ptr.vmem [resolvable:$true] %s27_s13  ;;  %s43_s16 = int_to_ptr.hbm [resolvable:$true] %s42_s16 }
   0x4   :  { %s2285_s17 = smov 192   ;;  %s2286_s18 = smov 12  }
   0x5   :  { %33 = dma.hbm_to_vmem [thread:$0]  %s26_s11, 3072, %s28_s13, [#allocation3], %s2285_s17, %s2285_s17, %s2286_s18  }
   0x6   :  { %s2287_s19 = smov [#allocation5]   ;;  %s2288_s21 = smov 384  }
   0x7   :  { %s44_s20 = sshll.u32 %s2287_s19, 4  ;;  %s2289_s22 = smov 24   ;;  %s45_s20 = int_to_ptr.vmem [resolvable:$true] %s44_s20 }
   0x8   :  { %50 = dma.hbm_to_vmem [thread:$0]  %s43_s16, 6144, %s45_s20, [#allocation6], %s2288_s21, %s2288_s21, %s2289_s22  }
   0x9   :  { %2278 = dma.done.wait [#allocation3], 3072  }
   0xa   :  { %2279 = vsyncadd [#allocation3], 4294964224 }
   0xb   :  { %2280 = dma.done.wait [#allocation6], 6144  }
   0xc   :  { %2281 = vsyncadd [#allocation6], 4294961152  ;;  %v1763_v0 = vld [vmem:[#allocation2 + $0xa8] sm:$0xf]  ;;  %v2047_v1 = vld [vmem:[#allocation2 + $0xb0] sm:$0xf0] }
   0xd   :  { %v1751_v2 = vld [vmem:[#allocation2 + $0x90] sm:$0xf]  ;;  %v2348_v3 = vor.u32 %v2047_v1, %v1763_v0  ;;  %v2044_v4 = vld [vmem:[#allocation2 + $0x98] sm:$0xf0]  ;;  %v1655_v5 = vld [vmem:[%s2874_s1 + $0x18] sm:$0xf] }
   0xe   :  { %v2023_v6 = vld [vmem:[%s2874_s1 + $0x20] sm:$0xf0]  ;;  %v2357_v7 = vor.u32 %v2044_v4, %v1751_v2  ;;  %v1643_v9 = vld [vmem:[%s2874_s1] sm:$0xf]  ;;  %v2020_v10 = vld [vmem:[%s2874_s1 + $0x8] sm:$0xf0] }
   0xf   :  { %410 = vmatpush.bf16.msra.mxu3 %v2348_v3  ;;  %v1656_v8 = vor.u32 %v2023_v6, %v1655_v5  ;;  %v1739_v11 = vld [vmem:[#allocation2 + $0x78] sm:$0xf]  ;;  %v2041_v12 = vld [vmem:[#allocation2 + $0x80] sm:$0xf0]  ;;  %v1644_v13 = vor.u32 %v2020_v10, %v1643_v9  ;;  %v1727_v15 = vld [vmem:[#allocation2 + $0x60] sm:$0xf] }
  0x10   :  { %v2366_v14 = vor.u32 %v2041_v12, %v1739_v11  ;;  %v2038_v16 = vld [vmem:[#allocation2 + $0x68] sm:$0xf0]  ;;  %v2371_v17 = vld [vmem:[%s2873_s0] sm:$0xff]  ;;  %v1771_v18 = vld [vmem:[#allocation2 + $0xb0] sm:$0xf]  ;;  %vm142_vm0 = vcmask 261120  }
  0x11   :  { %161 = vmatpush.bf16.msra.mxu0 %v1656_v8  ;;  %2105 = vmatpush.bf16.msra.mxu1 %v1656_v8  ;;  %v2048_v19 = vld [vmem:[#allocation2 + $0xb8] sm:$0xf0]  ;;  %v1759_v21 = vld [vmem:[#allocation2 + $0x98] sm:$0xf]  ;;  %v2045_v22 = vld [vmem:[#allocation2 + $0xa0] sm:$0xf0]  ;;  %v2376_v23 = vor.u32 %v2038_v16, %v1727_v15 }
  0x12   :  { %v2373_v20 = vor.u32 %v2048_v19, %v1771_v18  ;;  %v2381_v24 = vld [vmem:[%s2873_s0 + $0x18] sm:$0xff]  ;;  %v1715_v25 = vld [vmem:[#allocation2 + $0x48] sm:$0xf]  ;;  %v2035_v26 = vld [vmem:[#allocation2 + $0x50] sm:$0xf0]  ;;  %v2386_v27 = vor.u32 %v2045_v22, %v1759_v21  ;;  %v2290_v12 = vmov 0  }
  0x13   :  { %411 = vmatpush.bf16.msra.mxu3 %v2357_v7  ;;  %v1747_v28 = vld [vmem:[#allocation2 + $0x80] sm:$0xf]  ;;  %v2042_v29 = vld [vmem:[#allocation2 + $0x88] sm:$0xf0]  ;;  %v2391_v30 = vor.u32 %v2035_v26, %v1715_v25  ;;  %v1703_v31 = vld [vmem:[#allocation2 + $0x30] sm:$0xf] }
  0x14   :  { %v2032_v32 = vld [vmem:[#allocation2 + $0x38] sm:$0xf0]  ;;  %v2394_v33 = vor.u32 %v2042_v29, %v1747_v28  ;;  %v1735_v34 = vld [vmem:[#allocation2 + $0x68] sm:$0xf]  ;;  %v2039_v35 = vld [vmem:[#allocation2 + $0x70] sm:$0xf0] }
  0x15   :  { %162 = vmatpush.bf16.msra.mxu0 %v1644_v13  ;;  %2106 = vmatpush.bf16.msra.mxu1 %v1644_v13  ;;  %v2397_v36 = vor.u32 %v2032_v32, %v1703_v31  ;;  %v2022_v37 = vld [vmem:[%s2874_s1 + $0x1c] sm:$0xf]  ;;  %v1657_v38 = vld [vmem:[%s2874_s1 + $0x24] sm:$0xf0]  ;;  %v1691_v39 = vld [vmem:[#allocation2 + $0x18] sm:$0xf]  ;;  %v2406_v42 = vor.u32 %v2039_v35, %v1735_v34 }
  0x16   :  { %v2029_v40 = vld [vmem:[#allocation2 + $0x20] sm:$0xf0]  ;;  %v1660_v41 = vor.u32 %v2022_v37, %v1657_v38  ;;  %v1679_v43 = vld [vmem:[#allocation2] sm:$0xf]  ;;  %v1723_v44 = vld [vmem:[#allocation2 + $0x50] sm:$0xf] }
  0x17   :  { %412 = vmatpush.bf16.msra.mxu3 %v2366_v14  ;;  %v2036_v45 = vld [vmem:[#allocation2 + $0x58] sm:$0xf0]  ;;  %v2409_v46 = vor.u32 %v2029_v40, %v1691_v39  ;;  %v2026_v47 = vld [vmem:[#allocation2 + $0x8] sm:$0xf0]  ;;  %v2019_v48 = vld [vmem:[%s2874_s1 + $0x4] sm:$0xf] }
  0x18   :  { %1665 = vmatmul.msk.bf16.vlgmr.msra.gmra.mxu0 %vm142_vm0, %v2371_v17  ;;  %1668 = vmatmul.msk.bf16.vlgmr.msra.gmra.mxu1 %vm142_vm0, %v2381_v24  ;;  %v1645_v49 = vld [vmem:[%s2874_s1 + $0xc] sm:$0xf0]  ;;  %v2420_v50 = vld [vmem:[%s2873_s0 + $0x8] sm:$0xff]  ;;  %v1663_v52 = vld [vmem:[%s2874_s1 + $0x20] sm:$0xf]  ;;  %v2429_v56 = vor.u32 %v2036_v45, %v1723_v44  ;;  %v2432_v60 = vor.u32 %v2026_v47, %v1679_v43  ;;  %s2291_s25 = smov [#allocation7]  }
  0x19   :  { %436 = vmatpush.bf16.msrb.mxu0 %v2373_v20  ;;  %190 = vmatpush.bf16.msrb.mxu1 %v1660_v41  ;;  %v1648_v51 = vor.u32 %v2019_v48, %v1645_v49  ;;  %v2024_v53 = vld [vmem:[%s2874_s1 + $0x28] sm:$0xf0]  ;;  %v1765_v55 = vld [vmem:[#allocation2 + $0xb4] sm:$0xf0]  ;;  %v2033_v59 = vld [vmem:[#allocation2 + $0x40] sm:$0xf0] }
  0x1a   :  { %v2046_v54 = vld [vmem:[#allocation2 + $0xac] sm:$0xf]  ;;  %v1664_v57 = vor.u32 %v2024_v53, %v1663_v52  ;;  %v1711_v58 = vld [vmem:[#allocation2 + $0x38] sm:$0xf]  ;;  %v1651_v62 = vld [vmem:[%s2874_s1 + $0x8] sm:$0xf] }
  0x1b   :  { %413 = vmatpush.bf16.msra.mxu3 %v2376_v23  ;;  %v2434_v61 = vor.u32 %v2046_v54, %v1765_v55  ;;  %v2021_v63 = vld [vmem:[%s2874_s1 + $0x10] sm:$0xf0]  ;;  %v1753_v1 = vld [vmem:[#allocation2 + $0x9c] sm:$0xf0]  ;;  %v2446_v2 = vor.u32 %v2033_v59, %v1711_v58  ;;  %v2030_v6 = vld [vmem:[#allocation2 + $0x28] sm:$0xf0] }
  0x1c   :  { %219 = vmatpush.bf16.msra.mxu2 %v1664_v57  ;;  %v2043_v0 = vld [vmem:[#allocation2 + $0x94] sm:$0xf]  ;;  %v1652_v4 = vor.u32 %v2021_v63, %v1651_v62  ;;  %v1699_v5 = vld [vmem:[#allocation2 + $0x20] sm:$0xf]  ;;  %v2040_v9 = vld [vmem:[#allocation2 + $0x7c] sm:$0xf] }
  0x1d   :  { %437 = vmatpush.bf16.msrb.mxu0 %v2386_v27  ;;  %191 = vmatpush.bf16.msrb.mxu1 %v1648_v51  ;;  %v2452_v8 = vor.u32 %v2043_v0, %v1753_v1  ;;  %v1741_v10 = vld [vmem:[#allocation2 + $0x84] sm:$0xf0]  ;;  %v2456_v11 = vor.u32 %v2030_v6, %v1699_v5  ;;  %v2027_v15 = vld [vmem:[#allocation2 + $0x10] sm:$0xf0]  ;;  %v2037_v18 = vld [vmem:[#allocation2 + $0x64] sm:$0xf] }
  0x1e   :  { %v1687_v13 = vld [vmem:[#allocation2 + $0x8] sm:$0xf]  ;;  %v2462_v16 = vor.u32 %v2040_v9, %v1741_v10  ;;  %v1729_v19 = vld [vmem:[#allocation2 + $0x6c] sm:$0xf0]  ;;  %v2034_v25 = vld [vmem:[#allocation2 + $0x4c] sm:$0xf] }
  0x1f   :  { %414 = vmatpush.bf16.msra.mxu3 %v2391_v30  ;;  %v2466_v21 = vor.u32 %v2027_v15, %v1687_v13  ;;  %v2470_v22 = vor.u32 %v2037_v18, %v1729_v19  ;;  %v1717_v26 = vld [vmem:[#allocation2 + $0x54] sm:$0xf0]  ;;  %v2031_v29 = vld [vmem:[#allocation2 + $0x34] sm:$0xf]  ;;  %v1705_v31 = vld [vmem:[#allocation2 + $0x3c] sm:$0xf0] }
  0x20   :  { %220 = vmatpush.bf16.msra.mxu2 %v1652_v4  ;;  %v2480_v28 = vor.u32 %v2034_v25, %v1717_v26  ;;  %v2489_v32 = vor.u32 %v2031_v29, %v1705_v31  ;;  %v2028_v34 = vld [vmem:[#allocation2 + $0x1c] sm:$0xf]  ;;  %v1693_v35 = vld [vmem:[#allocation2 + $0x24] sm:$0xf0]  ;;  %v2025_v38 = vld [vmem:[#allocation2 + $0x4] sm:$0xf] }
  0x21   :  { %438 = vmatpush.bf16.msrb.mxu0 %v2394_v33  ;;  %496 = vmatpush.bf16.msra.mxu1 %v2348_v3  ;;  %v2497_v37 = vor.u32 %v2028_v34, %v1693_v35  ;;  %v1681_v39 = vld [vmem:[#allocation2 + $0xc] sm:$0xf0]  ;;  %v82_v43 = vld [vmem:[%s2876_s3] sm:$0x7]  ;;  %s1612_s26 = sshll.u32 %s2291_s25, 4  ;;  %s1614_s28 = sshll.u32 %s2882_s9, 4  ;;  %s1613_s26 = int_to_ptr.vmem [resolvable:$true] %s1612_s26  ;;  %s1615_s28 = int_to_ptr.hbm [resolvable:$true] %s1614_s28 }
  0x22   :  { %v2503_v40 = vor.u32 %v2025_v38, %v1681_v39  ;;  %v84_v44 = vperm.slane %v82_v43, 0  ;;  %v274_v53 = vld [vmem:[%s2877_s4] sm:$0x7]  ;;  %v2582_v19 = vperm.slane %v82_v43, 1 }
  0x23   :  { %415 = vmatpush.bf16.msra.mxu3 %v2397_v36  ;;  %1673 = vmatmul.msk.bf16.vlgmr.msra.gmra.mxu2 %vm142_vm0, %v2371_v17  ;;  %v2573_v55 = vperm.slane %v274_v53, 0  ;;  %v2584_v25 = vperm.slane %v274_v53, 1 }
  0x24   :  { %509 = vmatpush.bf16.msrb.mxu2 %v2434_v61 }
  0x25   :  { %439 = vmatpush.bf16.msrb.mxu0 %v2406_v42  ;;  %497 = vmatpush.bf16.msra.mxu1 %v2357_v7 }
  0x27   :  { %416 = vmatpush.bf16.msra.mxu3 %v2409_v46 }
  0x28   :  { %1666 = vmatmul.msk.bf16.gmra.mxu0 %vm142_vm0, %v2420_v50  ;;  %1669 = vmatmul.msk.bf16.vlgmr.msrb.gmra.mxu1 %vm142_vm0, %v2371_v17  ;;  %v2017_v17 = vld [vmem:[%s2873_s0 + $0x10] sm:$0xff] }
  0x29   :  { %440 = vmatpush.bf16.msrb.mxu0 %v2429_v56  ;;  %510 = vmatpush.bf16.msrb.mxu2 %v2452_v8 }
  0x2a   :  { %498 = vmatpush.bf16.msra.mxu1 %v2366_v14 }
  0x2b   :  { %417 = vmatpush.bf16.msra.mxu3 %v2432_v60 }
  0x2d   :  { %441 = vmatpush.bf16.msrb.mxu0 %v2446_v2  ;;  %511 = vmatpush.bf16.msrb.mxu2 %v2462_v16 }
  0x2e   :  { %418 = vmatmul.bf16.vlgmr.msra.gmra.mxu3 %v2290_v12  ;;  %499 = vmatpush.bf16.msra.mxu1 %v2376_v23 }
  0x2f   :  { %423 = vmatpush.bf16.msrb.mxu3 %v2434_v61 }
  0x31   :  { %442 = vmatpush.bf16.msrb.mxu0 %v2456_v11  ;;  %512 = vmatpush.bf16.msrb.mxu2 %v2470_v22 }
  0x32   :  { %500 = vmatpush.bf16.msra.mxu1 %v2391_v30 }
  0x33   :  { %424 = vmatpush.bf16.msrb.mxu3 %v2452_v8  ;;  %1674 = vmatmul.msk.bf16.gmra.mxu2 %vm142_vm0, %v2420_v50 }
  0x35   :  { %443 = vmatpush.bf16.msrb.mxu0 %v2466_v21  ;;  %513 = vmatpush.bf16.msrb.mxu2 %v2480_v28 }
  0x36   :  { %501 = vmatpush.bf16.msra.mxu1 %v2397_v36 }
  0x37   :  { %425 = vmatpush.bf16.msrb.mxu3 %v2462_v16 }
  0x38   :  { %1667 = vmatmul.msk.bf16.gmra.mxu0 %vm142_vm0, %v2017_v17  ;;  %1670 = vmatmul.msk.bf16.gmra.mxu1 %vm142_vm0, %v2420_v50 }
  0x39   :  { %582 = vmatpush.bf16.msra.mxu0 %v2348_v3  ;;  %514 = vmatpush.bf16.msrb.mxu2 %v2489_v32 }
  0x3a   :  { %502 = vmatpush.bf16.msra.mxu1 %v2409_v46 }
  0x3b   :  { %426 = vmatpush.bf16.msrb.mxu3 %v2470_v22 }
  0x3d   :  { %583 = vmatpush.bf16.msra.mxu0 %v2357_v7  ;;  %515 = vmatpush.bf16.msrb.mxu2 %v2497_v37 }
  0x3e   :  { %503 = vmatpush.bf16.msra.mxu1 %v2432_v60 }
  0x3f   :  { %427 = vmatpush.bf16.msrb.mxu3 %v2480_v28 }
  0x41   :  { %584 = vmatpush.bf16.msra.mxu0 %v2366_v14  ;;  %516 = vmatpush.bf16.msrb.mxu2 %v2503_v40 }
  0x42   :  { %595 = vmatpush.bf16.msrb.mxu1 %v2434_v61 }
  0x43   :  { %428 = vmatpush.bf16.msrb.mxu3 %v2489_v32  ;;  %1675 = vmatmul.msk.bf16.gmra.mxu2 %vm142_vm0, %v2017_v17 }
  0x45   :  { %585 = vmatpush.bf16.msra.mxu0 %v2376_v23  ;;  %608 = vmatpush.bf16.msra.mxu2 %v2373_v20 }
  0x46   :  { %596 = vmatpush.bf16.msrb.mxu1 %v2452_v8 }
  0x47   :  { %429 = vmatpush.bf16.msrb.mxu3 %v2497_v37 }
  0x48   :  { %444 = vmatmul.bf16.vlgmr.msrb.gmra.mxu0 %v2290_v12  ;;  %1671 = vmatmul.msk.bf16.gmra.mxu1 %vm142_vm0, %v2017_v17 }
  0x49   :  { %586 = vmatpush.bf16.msra.mxu0 %v2391_v30  ;;  %609 = vmatpush.bf16.msra.mxu2 %v2386_v27 }
  0x4a   :  { %597 = vmatpush.bf16.msrb.mxu1 %v2462_v16 }
  0x4b   :  { %430 = vmatpush.bf16.msrb.mxu3 %v2503_v40 }
  0x4d   :  { %587 = vmatpush.bf16.msra.mxu0 %v2397_v36  ;;  %610 = vmatpush.bf16.msra.mxu2 %v2394_v33 }
  0x4e   :  { %431 = vmatmul.bf16.vlgmr.msrb.gmra.mxu3 %v2290_v12  ;;  %598 = vmatpush.bf16.msrb.mxu1 %v2470_v22 }
  0x4f   :  { %522 = vmatpush.bf16.msra.mxu3 %v2373_v20 }
  0x51   :  { %588 = vmatpush.bf16.msra.mxu0 %v2409_v46  ;;  %611 = vmatpush.bf16.msra.mxu2 %v2406_v42 }
  0x52   :  { %599 = vmatpush.bf16.msrb.mxu1 %v2480_v28 }
  0x53   :  { %523 = vmatpush.bf16.msra.mxu3 %v2386_v27  ;;  %1676 = vmatmul.msk.bf16.gmra.mxu2 %vm142_vm0, %v2381_v24 }
  0x55   :  { %589 = vmatpush.bf16.msra.mxu0 %v2432_v60  ;;  %612 = vmatpush.bf16.msra.mxu2 %v2429_v56 }
  0x56   :  { %600 = vmatpush.bf16.msrb.mxu1 %v2489_v32 }
  0x57   :  { %524 = vmatpush.bf16.msra.mxu3 %v2394_v33 }
  0x58   :  { %1672 = vmatmul.msk.bf16.gmra.mxu1 %vm142_vm0, %v2381_v24 }
  0x59   :  { %681 = vmatpush.bf16.msrb.mxu0 %v2434_v61  ;;  %613 = vmatpush.bf16.msra.mxu2 %v2446_v2 }
  0x5a   :  { %601 = vmatpush.bf16.msrb.mxu1 %v2497_v37 }
  0x5b   :  { %525 = vmatpush.bf16.msra.mxu3 %v2406_v42 }
  0x5d   :  { %682 = vmatpush.bf16.msrb.mxu0 %v2452_v8  ;;  %614 = vmatpush.bf16.msra.mxu2 %v2456_v11 }
  0x5e   :  { %602 = vmatpush.bf16.msrb.mxu1 %v2503_v40 }
  0x5f   :  { %526 = vmatpush.bf16.msra.mxu3 %v2429_v56 }
  0x61   :  { %683 = vmatpush.bf16.msrb.mxu0 %v2462_v16  ;;  %615 = vmatpush.bf16.msra.mxu2 %v2466_v21 }
  0x63   :  { %527 = vmatpush.bf16.msra.mxu3 %v2446_v2 }
  0x65   :  { %684 = vmatpush.bf16.msrb.mxu0 %v2470_v22 }
  0x67   :  { %528 = vmatpush.bf16.msra.mxu3 %v2456_v11 }
  0x69   :  { %685 = vmatpush.bf16.msrb.mxu0 %v2480_v28 }
  0x6b   :  { %529 = vmatpush.bf16.msra.mxu3 %v2466_v21 }
  0x6d   :  { %686 = vmatpush.bf16.msrb.mxu0 %v2489_v32 }
  0x6f   :  { %668 = vmatpush.bf16.msrb.mxu3 %v2348_v3 }
  0x71   :  { %687 = vmatpush.bf16.msrb.mxu0 %v2497_v37 }
  0x73   :  { %669 = vmatpush.bf16.msrb.mxu3 %v2357_v7 }
  0x75   :  { %688 = vmatpush.bf16.msrb.mxu0 %v2503_v40 }
  0x77   :  { %670 = vmatpush.bf16.msrb.mxu3 %v2366_v14 }
  0x7b   :  { %671 = vmatpush.bf16.msrb.mxu3 %v2376_v23 }
  0x7f   :  { %672 = vmatpush.bf16.msrb.mxu3 %v2391_v30 }
  0x83   :  { %673 = vmatpush.bf16.msrb.mxu3 %v2397_v36 }
  0x87   :  { %674 = vmatpush.bf16.msrb.mxu3 %v2409_v46 }
  0x8b   :  { %675 = vmatpush.bf16.msrb.mxu3 %v2432_v60 }
  0x95   :  { %v164_v24 = vpop.f32.mrf.mxu0  ;;  %v179_v41 = vpop.f32.mrf.mxu1 }
  0x96   :  { %v2564_v49 = vadd.f32 %v179_v41, %v84_v44  ;;  %v165_v59 = vadd.f32 %v164_v24, %v84_v44 }
  0x98   :  { %2883 = vst [vmem:[#allocation11_spill] sm:$0xff] %v2564_v49 }
  0x9d   :  { %v166_v45 = vpop.f32.mrf.mxu0  ;;  %v181_v48 = vpop.f32.mrf.mxu1 }
  0x9e   :  { %v2562_v47 = vadd.f32 %v166_v45, %v84_v44  ;;  %v2566_v50 = vadd.f32 %v181_v48, %v84_v44  ;;  %v2588_v45 = vperm.slane %v274_v53, 2 }
  0xa0   :  { %2884 = vst [vmem:[#allocation12_spill] sm:$0xff] %v2566_v50 }
  0xa5   :  { %v169_v51 = vpop.f32.mrf.mxu0  ;;  %v193_v26 = vpop.f32.mrf.mxu1 }
  0xa6   :  { %v2568_v52 = vadd.f32 %v169_v51, %v84_v44  ;;  %v194_v29 = vadd.f32 %v193_v26, %v2582_v19 }
  0xad   :  { %v171_v54 = vpop.f32.mrf.mxu0 }
  0xae   :  { %v2575_v57 = vadd.f32 %v171_v54, %v84_v44 }
  0xb1   :  { %v419_v58 = vpop.f32.mrf.mxu3 }
  0xb2   :  { %v420_v62 = vadd.f32 %v419_v58, %v2573_v55 }
  0xb4   :  { %v449_v63 = vadd.f32 %v420_v62, %v165_v59  ;;  %v2591_v62 = vperm.slane %v82_v43, 2 }
  0xb5   :  { %v174_v0 = vpop.f32.mrf.mxu0 }
  0xb6   :  { %v1773_v1 = vmul.f32 -1.442695, %v449_v63  ;;  %v2578_v4 = vadd.f32 %v174_v0, %v84_v44  ;;  %v222_v0 = vpop.f32.mrf.mxu2 }
  0xb7   :  { %v223_v53 = vadd.f32 %v222_v0, %v2591_v62 }
  0xb8   :  { %2116 = vpow2.f32 %v1773_v1 }
  0xb9   :  { %v421_v5 = vpop.f32.mrf.mxu3 }
  0xbd   :  { %v176_v6 = vpop.f32.mrf.mxu0 }
  0xbe   :  { %v2117_v9 = vpop.eup %2116  ;;  %v2580_v10 = vadd.f32 %v176_v6, %v84_v44 }
  0xbf   :  { %v453_v12 = vadd.f32 1.0, %v2117_v9 }
  0xc1   :  { %2118 = vrcp.f32 %v453_v12  ;;  %v465_v44 = vand.u32 2147483648, %v453_v12  ;;  %vm459_vm2 = vweird.f32 %v453_v12  ;;  %v463_v48 = vand.u32 2147483647, %v453_v12 }
  0xc3   :  { %v466_v58 = vor.u32 1.1754944e-38, %v465_v44  ;;  %vm464_vm4 = vcmp.eq.f32.partialorder %v463_v48, 8.507059e+37  ;;  %v195_v44 = vpop.f32.mrf.mxu1  ;;  %v224_v48 = vpop.f32.mrf.mxu2 }
  0xc5   :  { %v445_v13 = vpop.f32.mrf.mxu0 }
  0xc6   :  { %v446_v59 = vadd.f32 %v445_v13, %v2588_v45 }
  0xc7   :  { %v2119_v15 = vpop.eup %2118 }
  0xc8   :  { %v455_v18 = vmul.f32 %v2119_v15, %v453_v12  ;;  %vm460_vm1 = vweird.f32 %v2119_v15 }
  0xc9   :  { %vm461_vm3 = vmor %vm459_vm2, %vm460_vm1 }
  0xca   :  { %v456_v17 = vsub.f32 1.0, %v455_v18 }
  0xcc   :  { %v457_v35 = vmul.f32 %v2119_v15, %v456_v17 }
  0xcd   :  { %v447_v31 = vpop.f32.mrf.mxu0 }
  0xce   :  { %v458_v24 = vadd.f32 %v2119_v15, %v457_v35 }
  0xd0   :  { %v462_v51 = vsel %vm461_vm3, %v2119_v15, %v458_v24 }
  0xd1   :  { %v432_v34 = vpop.f32.mrf.mxu3  ;;  %v467_v63 = vsel %vm464_vm4, %v466_v58, %v462_v51  ;;  %v2622_v51 = vpop.f32.mrf.mxu1 }
  0xd2   :  { %v433_v38 = vadd.f32 %v432_v34, %v2584_v25  ;;  %v489_v6 = vmul.f32 %v467_v63, %v446_v59 }
  0xd4   :  { %v469_v39 = vadd.f32 %v433_v38, %v194_v29  ;;  %v490_v9 = vadd.f32 %v489_v6, %v223_v53 }
  0xd6   :  { %v1774_v41 = vmul.f32 -1.442695, %v469_v39 }
  0xd8   :  { %2120 = vpow2.f32 %v1774_v41 }
  0xd9   :  { %v434_v54 = vpop.f32.mrf.mxu3  ;;  %v2626_v58 = vpop.f32.mrf.mxu1 }
  0xda   :  { %v2624_v54 = vpop.f32.mrf.mxu2 }
  0xde   :  { %v2121_v1 = vpop.eup %2120 }
  0xdf   :  { %v473_v5 = vadd.f32 1.0, %v2121_v1 }
  0xe1   :  { %2122 = vrcp.f32 %v473_v5  ;;  %v485_v17 = vand.u32 2147483648, %v473_v5  ;;  %v483_v13 = vand.u32 2147483647, %v473_v5  ;;  %vm479_vm6 = vweird.f32 %v473_v5  ;;  %v2630_v63 = vpop.f32.mrf.mxu1 }
  0xe2   :  { %2124 = vtanh.f32 %v490_v9  ;;  %v2628_v59 = vpop.f32.mrf.mxu2 }
  0xe3   :  { %v486_v31 = vor.u32 1.1754944e-38, %v485_v17  ;;  %vm484_vm8 = vcmp.eq.f32.partialorder %v483_v13, 8.507059e+37 }
  0xe7   :  { %v2123_v12 = vpop.eup %2122 }
  0xe8   :  { %v475_v18 = vmul.f32 %v2123_v12, %v473_v5  ;;  %vm480_vm5 = vweird.f32 %v2123_v12  ;;  %v2125_v29 = vpop.eup %2124 }
  0xe9   :  { %vm481_vm7 = vmor %vm479_vm6, %vm480_vm5  ;;  %v492_v34 = vsub.f32 0.0, %v2125_v29  ;;  %v2634_v1 = vpop.f32.mrf.mxu1 }
  0xea   :  { %v476_v15 = vsub.f32 1.0, %v475_v18  ;;  %v2632_v0 = vpop.f32.mrf.mxu2 }
  0xec   :  { %v477_v26 = vmul.f32 %v2123_v12, %v476_v15 }
  0xee   :  { %v478_v43 = vadd.f32 %v2123_v12, %v477_v26 }
  0xf0   :  { %v482_v35 = vsel %vm481_vm7, %v2123_v12, %v478_v43 }
  0xf1   :  { %v487_v38 = vsel %vm484_vm8, %v486_v31, %v482_v35  ;;  %v2638_v6 = vpop.f32.mrf.mxu1 }
  0xf2   :  { %v493_v39 = vmul.f32 %v492_v34, %v487_v38  ;;  %v2636_v5 = vpop.f32.mrf.mxu2  ;;  %2885 = vst [vmem:[#allocation13_spill] sm:$0xff] %v2638_v6 }
  0xf4   :  { %v2594_v24 = vadd.f32 %v2125_v29, %v493_v39  ;;  %v196_v29 = vadd.f32 %v195_v44, %v2582_v19 }
  0xf6   :  { %v495_v41 = vpack.c.bf16 %v2594_v24, %v2594_v24 }
  0xf8   :  { %504 = vmatmul.bf16.vlgmr.msra.gmra.mxu1 %v495_v41  ;;  %517 = vmatmul.bf16.vlgmr.msrb.gmra.mxu2 %v495_v41 }
  0xf9   :  { %530 = vmatmul.bf16.vlgmr.msra.gmra.mxu3 %v495_v41  ;;  %694 = vmatpush.bf16.msra.mxu1 %v2373_v20  ;;  %v2642_v9 = vpop.f32.mrf.mxu1 }
  0xfa   :  { %754 = vmatpush.bf16.msrb.mxu2 %v2348_v3  ;;  %767 = vmatpush.bf16.msra.mxu3 %v2434_v61  ;;  %v2640_v53 = vpop.f32.mrf.mxu2  ;;  %2887 = vst [vmem:[#allocation15_spill] sm:$0xff] %v2642_v9 }
  0xfb   :  { %2886 = vst [vmem:[#allocation14_spill] sm:$0xff] %v2640_v53 }
  0xfd   :  { %695 = vmatpush.bf16.msra.mxu1 %v2386_v27 }
  0xfe   :  { %755 = vmatpush.bf16.msrb.mxu2 %v2357_v7  ;;  %768 = vmatpush.bf16.msra.mxu3 %v2452_v8 }
 0x101   :  { %696 = vmatpush.bf16.msra.mxu1 %v2394_v33 }
 0x102   :  { %756 = vmatpush.bf16.msrb.mxu2 %v2366_v14  ;;  %769 = vmatpush.bf16.msra.mxu3 %v2462_v16  ;;  %v2644_v12 = vpop.f32.mrf.mxu2 }
 0x103   :  { %2888 = vst [vmem:[#allocation16_spill] sm:$0xff] %v2644_v12 }
 0x105   :  { %697 = vmatpush.bf16.msra.mxu1 %v2406_v42 }
 0x106   :  { %757 = vmatpush.bf16.msrb.mxu2 %v2376_v23  ;;  %770 = vmatpush.bf16.msra.mxu3 %v2470_v22 }
 0x109   :  { %698 = vmatpush.bf16.msra.mxu1 %v2429_v56 }
 0x10a   :  { %758 = vmatpush.bf16.msrb.mxu2 %v2391_v30  ;;  %771 = vmatpush.bf16.msra.mxu3 %v2480_v28 }
 0x10d   :  { %699 = vmatpush.bf16.msra.mxu1 %v2446_v2 }
 0x10e   :  { %759 = vmatpush.bf16.msrb.mxu2 %v2397_v36  ;;  %772 = vmatpush.bf16.msra.mxu3 %v2489_v32 }
 0x111   :  { %700 = vmatpush.bf16.msra.mxu1 %v2456_v11 }
 0x112   :  { %760 = vmatpush.bf16.msrb.mxu2 %v2409_v46  ;;  %773 = vmatpush.bf16.msra.mxu3 %v2497_v37 }
 0x115   :  { %701 = vmatpush.bf16.msra.mxu1 %v2466_v21 }
 0x116   :  { %761 = vmatpush.bf16.msrb.mxu2 %v2432_v60  ;;  %774 = vmatpush.bf16.msra.mxu3 %v2503_v40 }
 0x175   :  { %v505_v18 = vpop.f32.mrf.mxu1 }
 0x176   :  { %v506_v15 = vadd.f32 %v505_v18, %v2573_v55 }
 0x178   :  { %v535_v17 = vadd.f32 %v506_v15, %v2562_v47 }
 0x17a   :  { %v1775_v26 = vmul.f32 -1.442695, %v535_v17 }
 0x17b   :  { %v518_v13 = vpop.f32.mrf.mxu2 }
 0x17c   :  { %2126 = vpow2.f32 %v1775_v26  ;;  %v519_v43 = vadd.f32 %v518_v13, %v2584_v25  ;;  %v531_v31 = vpop.f32.mrf.mxu3 }
 0x17d   :  { %v507_v34 = vpop.f32.mrf.mxu1 }
 0x17e   :  { %v555_v35 = vadd.f32 %v519_v43, %v196_v29 }
 0x180   :  { %v1776_v38 = vmul.f32 -1.442695, %v555_v35 }
 0x182   :  { %v2127_v39 = vpop.eup %2126  ;;  %2128 = vpow2.f32 %v1776_v38 }
 0x183   :  { %v539_v41 = vadd.f32 1.0, %v2127_v39  ;;  %v520_v12 = vpop.f32.mrf.mxu2  ;;  %v225_v39 = vadd.f32 %v224_v48, %v2591_v62 }
 0x184   :  { %v533_v50 = vpop.f32.mrf.mxu3 }
 0x185   :  { %2130 = vrcp.f32 %v539_v41  ;;  %v551_v44 = vand.u32 2147483648, %v539_v41  ;;  %v549_v13 = vand.u32 2147483647, %v539_v41  ;;  %vm545_vm10 = vweird.f32 %v539_v41 }
 0x186   :  { %v532_v50 = vadd.f32 %v531_v31, %v2588_v45 }
 0x187   :  { %v552_v43 = vor.u32 1.1754944e-38, %v551_v44  ;;  %vm550_vm12 = vcmp.eq.f32.partialorder %v549_v13, 8.507059e+37 }
 0x188   :  { %v2129_v18 = vpop.eup %2128 }
 0x189   :  { %v559_v9 = vadd.f32 1.0, %v2129_v18 }
 0x18b   :  { %v2131_v47 = vpop.eup %2130  ;;  %2132 = vrcp.f32 %v559_v9  ;;  %v571_v6 = vand.u32 2147483648, %v559_v9  ;;  %vm565_vm14 = vweird.f32 %v559_v9 }
 0x18c   :  { %v541_v15 = vmul.f32 %v2131_v47, %v539_v41  ;;  %vm546_vm9 = vweird.f32 %v2131_v47 }
 0x18d   :  { %vm547_vm11 = vmor %vm545_vm10, %vm546_vm9 }
 0x18e   :  { %v542_v17 = vsub.f32 1.0, %v541_v15 }
 0x190   :  { %v543_v26 = vmul.f32 %v2131_v47, %v542_v17 }
 0x191   :  { %v2133_v53 = vpop.eup %2132 }
 0x192   :  { %v561_v34 = vmul.f32 %v2133_v53, %v559_v9  ;;  %v544_v29 = vadd.f32 %v2131_v47, %v543_v26  ;;  %vm566_vm13 = vweird.f32 %v2133_v53  ;;  %v569_v26 = vand.u32 2147483647, %v559_v9 }
 0x193   :  { %vm567_vm15 = vmor %vm565_vm14, %vm566_vm13 }
 0x194   :  { %v562_v35 = vsub.f32 1.0, %v561_v34  ;;  %v548_v12 = vsel %vm547_vm11, %v2131_v47, %v544_v29  ;;  %v572_v34 = vor.u32 1.1754944e-38, %v571_v6  ;;  %vm570_vm1 = vcmp.eq.f32.partialorder %v569_v26, 8.507059e+37 }
 0x195   :  { %v553_v38 = vsel %vm550_vm12, %v552_v43, %v548_v12  ;;  %v199_v6 = vadd.f32 %v2622_v51, %v2582_v19 }
 0x196   :  { %v575_v18 = vmul.f32 %v553_v38, %v532_v50  ;;  %v563_v15 = vmul.f32 %v2133_v53, %v562_v35 }
 0x198   :  { %v576_v49 = vadd.f32 %v575_v18, %v225_v39  ;;  %v564_v17 = vadd.f32 %v2133_v53, %v563_v15 }
 0x19a   :  { %2134 = vtanh.f32 %v576_v49  ;;  %v568_v41 = vsel %vm567_vm15, %v2133_v53, %v564_v17 }
 0x19b   :  { %v573_v47 = vsel %vm570_vm1, %v572_v34, %v568_v41 }
 0x1a0   :  { %v2135_v44 = vpop.eup %2134 }
 0x1a1   :  { %v578_v31 = vsub.f32 %v2594_v24, %v2135_v44 }
 0x1a3   :  { %v579_v13 = vmul.f32 %v578_v31, %v573_v47 }
 0x1a5   :  { %v2653_v29 = vadd.f32 %v2135_v44, %v579_v13 }
 0x1a7   :  { %v581_v48 = vpack.c.bf16 %v2653_v29, %v2653_v29 }
 0x1a9   :  { %590 = vmatmul.bf16.vlgmr.msra.gmra.mxu0 %v581_v48  ;;  %603 = vmatmul.bf16.vlgmr.msrb.gmra.mxu1 %v581_v48 }
 0x1aa   :  { %616 = vmatmul.bf16.vlgmr.msra.gmra.mxu2 %v581_v48  ;;  %780 = vmatpush.bf16.msra.mxu0 %v2373_v20 }
 0x1ab   :  { %840 = vmatpush.bf16.msrb.mxu1 %v2348_v3  ;;  %853 = vmatpush.bf16.msra.mxu2 %v2434_v61 }
 0x1ae   :  { %781 = vmatpush.bf16.msra.mxu0 %v2386_v27 }
 0x1af   :  { %841 = vmatpush.bf16.msrb.mxu1 %v2357_v7  ;;  %854 = vmatpush.bf16.msra.mxu2 %v2452_v8 }
 0x1b2   :  { %782 = vmatpush.bf16.msra.mxu0 %v2394_v33 }
 0x1b3   :  { %842 = vmatpush.bf16.msrb.mxu1 %v2366_v14  ;;  %855 = vmatpush.bf16.msra.mxu2 %v2462_v16 }
 0x1b6   :  { %783 = vmatpush.bf16.msra.mxu0 %v2406_v42 }
 0x1b7   :  { %843 = vmatpush.bf16.msrb.mxu1 %v2376_v23  ;;  %856 = vmatpush.bf16.msra.mxu2 %v2470_v22 }
 0x1ba   :  { %784 = vmatpush.bf16.msra.mxu0 %v2429_v56 }
 0x1bb   :  { %844 = vmatpush.bf16.msrb.mxu1 %v2391_v30  ;;  %857 = vmatpush.bf16.msra.mxu2 %v2480_v28 }
 0x1be   :  { %785 = vmatpush.bf16.msra.mxu0 %v2446_v2 }
 0x1bf   :  { %845 = vmatpush.bf16.msrb.mxu1 %v2397_v36  ;;  %858 = vmatpush.bf16.msra.mxu2 %v2489_v32 }
 0x1c2   :  { %786 = vmatpush.bf16.msra.mxu0 %v2456_v11 }
 0x1c3   :  { %846 = vmatpush.bf16.msrb.mxu1 %v2409_v46  ;;  %859 = vmatpush.bf16.msra.mxu2 %v2497_v37 }
 0x1c6   :  { %787 = vmatpush.bf16.msra.mxu0 %v2466_v21 }
 0x1c7   :  { %847 = vmatpush.bf16.msrb.mxu1 %v2432_v60  ;;  %860 = vmatpush.bf16.msra.mxu2 %v2503_v40 }
 0x226   :  { %v591_v49 = vpop.f32.mrf.mxu0  ;;  %v604_v24 = vpop.f32.mrf.mxu1 }
 0x227   :  { %v592_v53 = vadd.f32 %v591_v49, %v2573_v55  ;;  %v605_v9 = vadd.f32 %v604_v24, %v2584_v25 }
 0x229   :  { %v621_v43 = vadd.f32 %v592_v53, %v2568_v52  ;;  %v641_v35 = vadd.f32 %v605_v9, %v199_v6 }
 0x22b   :  { %v1777_v50 = vmul.f32 -1.442695, %v621_v43  ;;  %v1778_v12 = vmul.f32 -1.442695, %v641_v35 }
 0x22d   :  { %2136 = vpow2.f32 %v1777_v50  ;;  %v617_v38 = vpop.f32.mrf.mxu2  ;;  %v228_v50 = vadd.f32 %v2624_v54, %v2591_v62 }
 0x22e   :  { %2138 = vpow2.f32 %v1778_v12  ;;  %v593_v39 = vpop.f32.mrf.mxu0  ;;  %v606_v18 = vpop.f32.mrf.mxu1  ;;  %v618_v9 = vadd.f32 %v617_v38, %v2588_v45 }
 0x233   :  { %v2137_v15 = vpop.eup %2136 }
 0x234   :  { %v2139_v17 = vpop.eup %2138  ;;  %v625_v26 = vadd.f32 1.0, %v2137_v15 }
 0x235   :  { %v645_v41 = vadd.f32 1.0, %v2139_v17  ;;  %v619_v44 = vpop.f32.mrf.mxu2 }
 0x236   :  { %2140 = vrcp.f32 %v625_v26  ;;  %v637_v13 = vand.u32 2147483648, %v625_v26  ;;  %v635_v49 = vand.u32 2147483647, %v625_v26  ;;  %vm631_vm3 = vweird.f32 %v625_v26 }
 0x237   :  { %2142 = vrcp.f32 %v645_v41  ;;  %v657_v17 = vand.u32 2147483648, %v645_v41  ;;  %vm651_vm7 = vweird.f32 %v645_v41 }
 0x238   :  { %v638_v53 = vor.u32 1.1754944e-38, %v637_v13  ;;  %vm636_vm5 = vcmp.eq.f32.partialorder %v635_v49, 8.507059e+37 }
 0x23c   :  { %v2141_v51 = vpop.eup %2140 }
 0x23d   :  { %v2143_v34 = vpop.eup %2142  ;;  %v627_v31 = vmul.f32 %v2141_v51, %v625_v26  ;;  %vm632_vm2 = vweird.f32 %v2141_v51  ;;  %v655_v26 = vand.u32 2147483647, %v645_v41 }
 0x23e   :  { %v647_v52 = vmul.f32 %v2143_v34, %v645_v41  ;;  %vm633_vm4 = vmor %vm631_vm3, %vm632_vm2  ;;  %vm652_vm6 = vweird.f32 %v2143_v34  ;;  %v201_v41 = vadd.f32 %v2626_v58, %v2582_v19 }
 0x23f   :  { %v628_v47 = vsub.f32 1.0, %v627_v31  ;;  %vm653_vm8 = vmor %vm651_vm7, %vm652_vm6  ;;  %vm656_vm9 = vcmp.eq.f32.partialorder %v655_v26, 8.507059e+37 }
 0x240   :  { %v648_v6 = vsub.f32 1.0, %v647_v52 }
 0x241   :  { %v629_v48 = vmul.f32 %v2141_v51, %v628_v47  ;;  %v658_v47 = vor.u32 1.1754944e-38, %v657_v17 }
 0x242   :  { %v649_v39 = vmul.f32 %v2143_v34, %v648_v6 }
 0x243   :  { %v630_v24 = vadd.f32 %v2141_v51, %v629_v48 }
 0x244   :  { %v650_v15 = vadd.f32 %v2143_v34, %v649_v39 }
 0x245   :  { %v634_v43 = vsel %vm633_vm4, %v2141_v51, %v630_v24 }
 0x246   :  { %v639_v35 = vsel %vm636_vm5, %v638_v53, %v634_v43  ;;  %v654_v44 = vsel %vm653_vm8, %v2143_v34, %v650_v15 }
 0x247   :  { %v661_v12 = vmul.f32 %v639_v35, %v618_v9  ;;  %v659_v51 = vsel %vm656_vm9, %v658_v47, %v654_v44 }
 0x249   :  { %v662_v18 = vadd.f32 %v661_v12, %v228_v50 }
 0x24b   :  { %2144 = vtanh.f32 %v662_v18 }
 0x251   :  { %v2145_v31 = vpop.eup %2144 }
 0x252   :  { %v664_v38 = vsub.f32 %v2653_v29, %v2145_v31 }
 0x254   :  { %v665_v52 = vmul.f32 %v664_v38, %v659_v51 }
 0x256   :  { %v2690_v13 = vadd.f32 %v2145_v31, %v665_v52 }
 0x258   :  { %v667_v54 = vpack.c.bf16 %v2690_v13, %v2690_v13 }
 0x25a   :  { %676 = vmatmul.bf16.vlgmr.msrb.gmra.mxu3 %v667_v54  ;;  %689 = vmatmul.bf16.vlgmr.msrb.gmra.mxu0 %v667_v54 }
 0x25b   :  { %702 = vmatmul.bf16.vlgmr.msra.gmra.mxu1 %v667_v54  ;;  %866 = vmatpush.bf16.msrb.mxu3 %v2373_v20 }
 0x25c   :  { %926 = vmatpush.bf16.msrb.mxu0 %v2348_v3  ;;  %939 = vmatpush.bf16.msra.mxu1 %v2434_v61 }
 0x25f   :  { %867 = vmatpush.bf16.msrb.mxu3 %v2386_v27 }
 0x260   :  { %927 = vmatpush.bf16.msrb.mxu0 %v2357_v7  ;;  %940 = vmatpush.bf16.msra.mxu1 %v2452_v8 }
 0x263   :  { %868 = vmatpush.bf16.msrb.mxu3 %v2394_v33 }
 0x264   :  { %928 = vmatpush.bf16.msrb.mxu0 %v2366_v14  ;;  %941 = vmatpush.bf16.msra.mxu1 %v2462_v16 }
 0x267   :  { %869 = vmatpush.bf16.msrb.mxu3 %v2406_v42 }
 0x268   :  { %929 = vmatpush.bf16.msrb.mxu0 %v2376_v23  ;;  %942 = vmatpush.bf16.msra.mxu1 %v2470_v22 }
 0x26b   :  { %870 = vmatpush.bf16.msrb.mxu3 %v2429_v56 }
 0x26c   :  { %930 = vmatpush.bf16.msrb.mxu0 %v2391_v30  ;;  %943 = vmatpush.bf16.msra.mxu1 %v2480_v28 }
 0x26f   :  { %871 = vmatpush.bf16.msrb.mxu3 %v2446_v2 }
 0x270   :  { %931 = vmatpush.bf16.msrb.mxu0 %v2397_v36  ;;  %944 = vmatpush.bf16.msra.mxu1 %v2489_v32 }
 0x273   :  { %872 = vmatpush.bf16.msrb.mxu3 %v2456_v11 }
 0x274   :  { %932 = vmatpush.bf16.msrb.mxu0 %v2409_v46  ;;  %945 = vmatpush.bf16.msra.mxu1 %v2497_v37 }
 0x277   :  { %873 = vmatpush.bf16.msrb.mxu3 %v2466_v21 }
 0x278   :  { %933 = vmatpush.bf16.msrb.mxu0 %v2432_v60  ;;  %946 = vmatpush.bf16.msra.mxu1 %v2503_v40 }
 0x2d7   :  { %v690_v29 = vpop.f32.mrf.mxu0 }
 0x2d8   :  { %v691_v34 = vadd.f32 %v690_v29, %v2584_v25  ;;  %v703_v48 = vpop.f32.mrf.mxu1 }
 0x2da   :  { %v727_v49 = vadd.f32 %v691_v34, %v201_v41  ;;  %v704_v41 = vadd.f32 %v703_v48, %v2588_v45 }
 0x2dc   :  { %v1780_v24 = vmul.f32 -1.442695, %v727_v49 }
 0x2dd   :  { %v677_v6 = vpop.f32.mrf.mxu3 }
 0x2de   :  { %v678_v53 = vadd.f32 %v677_v6, %v2573_v55  ;;  %2146 = vpow2.f32 %v1780_v24  ;;  %v230_v24 = vadd.f32 %v2628_v59, %v2591_v62 }
 0x2df   :  { %v692_v9 = vpop.f32.mrf.mxu0 }
 0x2e0   :  { %v707_v43 = vadd.f32 %v678_v53, %v2575_v57  ;;  %v705_v35 = vpop.f32.mrf.mxu1 }
 0x2e2   :  { %v1779_v50 = vmul.f32 -1.442695, %v707_v43 }
 0x2e4   :  { %2148 = vpow2.f32 %v1779_v50  ;;  %v2147_v39 = vpop.eup %2146 }
 0x2e5   :  { %v679_v12 = vpop.f32.mrf.mxu3  ;;  %v731_v15 = vadd.f32 1.0, %v2147_v39 }
 0x2e7   :  { %v743_v35 = vand.u32 2147483648, %v731_v15  ;;  %vm737_vm15 = vweird.f32 %v731_v15  ;;  %v741_v50 = vand.u32 2147483647, %v731_v15 }
 0x2e9   :  { %vm742_vm2 = vcmp.eq.f32.partialorder %v741_v50, 8.507059e+37 }
 0x2ea   :  { %v2149_v18 = vpop.eup %2148 }
 0x2eb   :  { %v711_v58 = vadd.f32 1.0, %v2149_v18  ;;  %v744_v18 = vor.u32 1.1754944e-38, %v743_v35 }
 0x2ed   :  { %2150 = vrcp.f32 %v711_v58  ;;  %v723_v38 = vand.u32 2147483648, %v711_v58  ;;  %v721_v57 = vand.u32 2147483647, %v711_v58  ;;  %vm717_vm11 = vweird.f32 %v711_v58 }
 0x2ee   :  { %2152 = vrcp.f32 %v731_v15 }
 0x2ef   :  { %v724_v29 = vor.u32 1.1754944e-38, %v723_v38  ;;  %vm722_vm13 = vcmp.eq.f32.partialorder %v721_v57, 8.507059e+37 }
 0x2f3   :  { %v2151_v17 = vpop.eup %2150 }
 0x2f4   :  { %v2153_v26 = vpop.eup %2152  ;;  %v713_v44 = vmul.f32 %v2151_v17, %v711_v58  ;;  %vm718_vm10 = vweird.f32 %v2151_v17 }
 0x2f5   :  { %v733_v47 = vmul.f32 %v2153_v26, %v731_v15  ;;  %vm719_vm12 = vmor %vm717_vm11, %vm718_vm10  ;;  %vm738_vm14 = vweird.f32 %v2153_v26 }
 0x2f6   :  { %v714_v31 = vsub.f32 1.0, %v713_v44  ;;  %vm739_vm1 = vmor %vm737_vm15, %vm738_vm14 }
 0x2f7   :  { %v734_v54 = vsub.f32 1.0, %v733_v47 }
 0x2f8   :  { %v715_v51 = vmul.f32 %v2151_v17, %v714_v31 }
 0x2f9   :  { %v735_v53 = vmul.f32 %v2153_v26, %v734_v54 }
 0x2fa   :  { %v716_v52 = vadd.f32 %v2151_v17, %v715_v51 }
 0x2fb   :  { %v736_v43 = vadd.f32 %v2153_v26, %v735_v53 }
 0x2fc   :  { %v720_v34 = vsel %vm719_vm12, %v2151_v17, %v716_v52 }
 0x2fd   :  { %v725_v49 = vsel %vm722_vm13, %v724_v29, %v720_v34  ;;  %v740_v12 = vsel %vm739_vm1, %v2153_v26, %v736_v43 }
 0x2fe   :  { %v747_v6 = vmul.f32 %v725_v49, %v704_v41  ;;  %v745_v58 = vsel %vm742_vm2, %v744_v18, %v740_v12  ;;  %v233_v49 = vadd.f32 %v2632_v0, %v2591_v62 }
 0x300   :  { %v748_v9 = vadd.f32 %v747_v6, %v230_v24 }
 0x302   :  { %2154 = vtanh.f32 %v748_v9 }
 0x308   :  { %v2155_v39 = vpop.eup %2154 }
 0x309   :  { %v750_v48 = vsub.f32 %v2690_v13, %v2155_v39 }
 0x30b   :  { %v751_v17 = vmul.f32 %v750_v48, %v745_v58 }
 0x30d   :  { %v2727_v44 = vadd.f32 %v2155_v39, %v751_v17 }
 0x30f   :  { %v753_v59 = vpack.c.bf16 %v2727_v44, %v2727_v44 }
 0x311   :  { %762 = vmatmul.bf16.vlgmr.msrb.gmra.mxu2 %v753_v59  ;;  %775 = vmatmul.bf16.vlgmr.msra.gmra.mxu3 %v753_v59 }
 0x312   :  { %788 = vmatmul.bf16.vlgmr.msra.gmra.mxu0 %v753_v59  ;;  %952 = vmatpush.bf16.msrb.mxu2 %v2373_v20 }
 0x313   :  { %1012 = vmatpush.bf16.msra.mxu3 %v2348_v3  ;;  %1025 = vmatpush.bf16.msra.mxu0 %v2434_v61 }
 0x316   :  { %953 = vmatpush.bf16.msrb.mxu2 %v2386_v27 }
 0x317   :  { %1013 = vmatpush.bf16.msra.mxu3 %v2357_v7  ;;  %1026 = vmatpush.bf16.msra.mxu0 %v2452_v8 }
 0x31a   :  { %954 = vmatpush.bf16.msrb.mxu2 %v2394_v33 }
 0x31b   :  { %1014 = vmatpush.bf16.msra.mxu3 %v2366_v14  ;;  %1027 = vmatpush.bf16.msra.mxu0 %v2462_v16 }
 0x31e   :  { %955 = vmatpush.bf16.msrb.mxu2 %v2406_v42 }
 0x31f   :  { %1015 = vmatpush.bf16.msra.mxu3 %v2376_v23  ;;  %1028 = vmatpush.bf16.msra.mxu0 %v2470_v22  ;;  %v204_v23 = vadd.f32 %v2630_v63, %v2582_v19 }
 0x322   :  { %956 = vmatpush.bf16.msrb.mxu2 %v2429_v56 }
 0x323   :  { %1016 = vmatpush.bf16.msra.mxu3 %v2391_v30  ;;  %1029 = vmatpush.bf16.msra.mxu0 %v2480_v28 }
 0x326   :  { %957 = vmatpush.bf16.msrb.mxu2 %v2446_v2 }
 0x327   :  { %1017 = vmatpush.bf16.msra.mxu3 %v2397_v36  ;;  %1030 = vmatpush.bf16.msra.mxu0 %v2489_v32 }
 0x32a   :  { %958 = vmatpush.bf16.msrb.mxu2 %v2456_v11 }
 0x32b   :  { %1018 = vmatpush.bf16.msra.mxu3 %v2409_v46  ;;  %1031 = vmatpush.bf16.msra.mxu0 %v2497_v37 }
 0x32e   :  { %959 = vmatpush.bf16.msrb.mxu2 %v2466_v21 }
 0x32f   :  { %1019 = vmatpush.bf16.msra.mxu3 %v2432_v60  ;;  %1032 = vmatpush.bf16.msra.mxu0 %v2503_v40 }
 0x38f   :  { %v789_v3 = vpop.f32.mrf.mxu0 }
 0x390   :  { %v790_v29 = vadd.f32 %v789_v3, %v2588_v45 }
 0x394   :  { %v763_v7 = vpop.f32.mrf.mxu2  ;;  %v776_v14 = vpop.f32.mrf.mxu3 }
 0x395   :  { %v764_v30 = vadd.f32 %v763_v7, %v2573_v55  ;;  %v777_v36 = vadd.f32 %v776_v14, %v2584_v25 }
 0x397   :  { %v793_v46 = vadd.f32 %v764_v30, %v2578_v4  ;;  %v813_v61 = vadd.f32 %v777_v36, %v204_v23  ;;  %v791_v8 = vpop.f32.mrf.mxu0 }
 0x399   :  { %v1781_v16 = vmul.f32 -1.442695, %v793_v46  ;;  %v1782_v22 = vmul.f32 -1.442695, %v813_v61 }
 0x39b   :  { %2156 = vpow2.f32 %v1781_v16 }
 0x39c   :  { %2158 = vpow2.f32 %v1782_v22  ;;  %v765_v60 = vpop.f32.mrf.mxu2  ;;  %v778_v28 = vpop.f32.mrf.mxu3 }
 0x3a1   :  { %v2157_v32 = vpop.eup %2156 }
 0x3a2   :  { %v2159_v37 = vpop.eup %2158  ;;  %v797_v40 = vadd.f32 1.0, %v2157_v32 }
 0x3a3   :  { %v817_v13 = vadd.f32 1.0, %v2159_v37 }
 0x3a4   :  { %2160 = vrcp.f32 %v797_v40  ;;  %v809_v47 = vand.u32 2147483648, %v797_v40  ;;  %v807_v51 = vand.u32 2147483647, %v797_v40  ;;  %vm803_vm4 = vweird.f32 %v797_v40 }
 0x3a5   :  { %2162 = vrcp.f32 %v817_v13  ;;  %v829_v43 = vand.u32 2147483648, %v817_v13  ;;  %vm823_vm8 = vweird.f32 %v817_v13  ;;  %v827_v35 = vand.u32 2147483647, %v817_v13 }
 0x3a6   :  { %v810_v52 = vor.u32 1.1754944e-38, %v809_v47  ;;  %vm808_vm6 = vcmp.eq.f32.partialorder %v807_v51, 8.507059e+37 }
 0x3a7   :  { %v830_v39 = vor.u32 1.1754944e-38, %v829_v43  ;;  %vm828_vm10 = vcmp.eq.f32.partialorder %v827_v35, 8.507059e+37 }
 0x3aa   :  { %v2161_v63 = vpop.eup %2160 }
 0x3ab   :  { %v2163_v15 = vpop.eup %2162  ;;  %v799_v26 = vmul.f32 %v2161_v63, %v797_v40  ;;  %vm804_vm3 = vweird.f32 %v2161_v63 }
 0x3ac   :  { %v819_v4 = vmul.f32 %v2163_v15, %v817_v13  ;;  %vm805_vm5 = vmor %vm803_vm4, %vm804_vm3  ;;  %vm824_vm7 = vweird.f32 %v2163_v15 }
 0x3ad   :  { %v800_v31 = vsub.f32 1.0, %v799_v26  ;;  %vm825_vm9 = vmor %vm823_vm8, %vm824_vm7  ;;  %v235_v26 = vadd.f32 %v2636_v5, %v2591_v62 }
 0x3ae   :  { %v820_v54 = vsub.f32 1.0, %v819_v4 }
 0x3af   :  { %v801_v38 = vmul.f32 %v2161_v63, %v800_v31 }
 0x3b0   :  { %v821_v6 = vmul.f32 %v2163_v15, %v820_v54 }
 0x3b1   :  { %v802_v57 = vadd.f32 %v2161_v63, %v801_v38 }
 0x3b2   :  { %v822_v9 = vadd.f32 %v2163_v15, %v821_v6 }
 0x3b3   :  { %v806_v41 = vsel %vm805_vm5, %v2161_v63, %v802_v57 }
 0x3b4   :  { %v811_v34 = vsel %vm808_vm6, %v810_v52, %v806_v41  ;;  %v826_v50 = vsel %vm825_vm9, %v2163_v15, %v822_v9  ;;  %v2889_v9 = vld [vmem:[#allocation13_spill] sm:$0xff] }
 0x3b5   :  { %v833_v24 = vmul.f32 %v811_v34, %v790_v29  ;;  %v831_v48 = vsel %vm828_vm10, %v830_v39, %v826_v50  ;;  %v209_v43 = vadd.f32 %v2889_v9, %v2582_v19  ;;  %v1911_v9 = vld [vmem:[#allocation5 + $0xf0] sm:$0xf] }
 0x3b7   :  { %v834_v53 = vadd.f32 %v833_v24, %v233_v49 }
 0x3b9   :  { %2164 = vtanh.f32 %v834_v53 }
 0x3bf   :  { %v2165_v12 = vpop.eup %2164 }
 0x3c0   :  { %v836_v18 = vsub.f32 %v2727_v44, %v2165_v12 }
 0x3c2   :  { %v837_v58 = vmul.f32 %v836_v18, %v831_v48 }
 0x3c4   :  { %v2764_v17 = vadd.f32 %v2165_v12, %v837_v58  ;;  %v2890_v12 = vld [vmem:[#allocation11_spill] sm:$0xff] }
 0x3c6   :  { %v839_v0 = vpack.c.bf16 %v2764_v17, %v2764_v17 }
 0x3c8   :  { %848 = vmatmul.bf16.vlgmr.msrb.gmra.mxu1 %v839_v0  ;;  %861 = vmatmul.bf16.vlgmr.msra.gmra.mxu2 %v839_v0 }
 0x3c9   :  { %874 = vmatmul.bf16.vlgmr.msrb.gmra.mxu3 %v839_v0  ;;  %1038 = vmatpush.bf16.msrb.mxu1 %v2373_v20 }
 0x3cd   :  { %1039 = vmatpush.bf16.msrb.mxu1 %v2386_v27  ;;  %v206_v27 = vadd.f32 %v2634_v1, %v2582_v19 }
 0x3d1   :  { %1040 = vmatpush.bf16.msrb.mxu1 %v2394_v33 }
 0x3d5   :  { %1041 = vmatpush.bf16.msrb.mxu1 %v2406_v42 }
 0x3d9   :  { %1042 = vmatpush.bf16.msrb.mxu1 %v2429_v56 }
 0x3dd   :  { %1043 = vmatpush.bf16.msrb.mxu1 %v2446_v2 }
 0x3e1   :  { %1044 = vmatpush.bf16.msrb.mxu1 %v2456_v11 }
 0x3e5   :  { %1045 = vmatpush.bf16.msrb.mxu1 %v2466_v21 }
 0x445   :  { %v849_v44 = vpop.f32.mrf.mxu1 }
 0x446   :  { %v850_v59 = vadd.f32 %v849_v44, %v2573_v55 }
 0x448   :  { %v879_v3 = vadd.f32 %v850_v59, %v2580_v10 }
 0x44a   :  { %v1783_v20 = vmul.f32 -1.442695, %v879_v3 }
 0x44b   :  { %v862_v7 = vpop.f32.mrf.mxu2 }
 0x44c   :  { %2166 = vpow2.f32 %v1783_v20  ;;  %v863_v33 = vadd.f32 %v862_v7, %v2584_v25  ;;  %v875_v42 = vpop.f32.mrf.mxu3 }
 0x44d   :  { %v851_v56 = vpop.f32.mrf.mxu1  ;;  %v876_v13 = vadd.f32 %v875_v42, %v2588_v45 }
 0x44e   :  { %v899_v2 = vadd.f32 %v863_v33, %v206_v27 }
 0x450   :  { %v1784_v14 = vmul.f32 -1.442695, %v899_v2 }
 0x452   :  { %v2167_v11 = vpop.eup %2166  ;;  %2168 = vpow2.f32 %v1784_v14 }
 0x453   :  { %v883_v21 = vadd.f32 1.0, %v2167_v11  ;;  %v864_v23 = vpop.f32.mrf.mxu2 }
 0x454   :  { %v877_v30 = vpop.f32.mrf.mxu3 }
 0x455   :  { %2170 = vrcp.f32 %v883_v21  ;;  %v895_v1 = vand.u32 2147483648, %v883_v21  ;;  %v893_v22 = vand.u32 2147483647, %v883_v21  ;;  %vm889_vm12 = vweird.f32 %v883_v21 }
 0x457   :  { %v896_v37 = vor.u32 1.1754944e-38, %v895_v1  ;;  %vm894_vm14 = vcmp.eq.f32.partialorder %v893_v22, 8.507059e+37  ;;  %v2891_v1 = vld [vmem:[#allocation14_spill] sm:$0xff] }
 0x458   :  { %v2169_v36 = vpop.eup %2168 }
 0x459   :  { %v903_v10 = vadd.f32 1.0, %v2169_v36 }
 0x45b   :  { %v2171_v46 = vpop.eup %2170  ;;  %2172 = vrcp.f32 %v903_v10  ;;  %v915_v51 = vand.u32 2147483648, %v903_v10  ;;  %vm909_vm1 = vweird.f32 %v903_v10  ;;  %v913_v57 = vand.u32 2147483647, %v903_v10 }
 0x45c   :  { %v885_v61 = vmul.f32 %v2171_v46, %v883_v21  ;;  %vm890_vm11 = vweird.f32 %v2171_v46 }
 0x45d   :  { %vm891_vm13 = vmor %vm889_vm12, %vm890_vm11  ;;  %v916_v29 = vor.u32 1.1754944e-38, %v915_v51  ;;  %vm914_vm3 = vcmp.eq.f32.partialorder %v913_v57, 8.507059e+37  ;;  %v1959_v51 = vld [vmem:[#allocation5 + $0x150] sm:$0xf]  ;;  %v2094_v57 = vld [vmem:[#allocation5 + $0x164] sm:$0xf0] }
 0x45e   :  { %v886_v8 = vsub.f32 1.0, %v885_v61 }
 0x460   :  { %v887_v16 = vmul.f32 %v2171_v46, %v886_v8 }
 0x461   :  { %v2173_v60 = vpop.eup %2172 }
 0x462   :  { %v905_v28 = vmul.f32 %v2173_v60, %v903_v10  ;;  %v888_v32 = vadd.f32 %v2171_v46, %v887_v16  ;;  %vm910_vm15 = vweird.f32 %v2173_v60  ;;  %v238_v16 = vadd.f32 %v2891_v1, %v2591_v62  ;;  %v1839_v1 = vld [vmem:[#allocation5 + $0x60] sm:$0xf] }
 0x463   :  { %vm911_vm2 = vmor %vm909_vm1, %vm910_vm15 }
 0x464   :  { %v906_v40 = vsub.f32 1.0, %v905_v28  ;;  %v892_v63 = vsel %vm891_vm13, %v2171_v46, %v888_v32 }
 0x465   :  { %v897_v15 = vsel %vm894_vm14, %v896_v37, %v892_v63 }
 0x466   :  { %v919_v31 = vmul.f32 %v897_v15, %v876_v13  ;;  %v907_v47 = vmul.f32 %v2173_v60, %v906_v40 }
 0x468   :  { %v920_v4 = vadd.f32 %v919_v31, %v235_v26  ;;  %v908_v38 = vadd.f32 %v2173_v60, %v907_v47 }
 0x46a   :  { %2174 = vtanh.f32 %v920_v4  ;;  %v912_v52 = vsel %vm911_vm2, %v2173_v60, %v908_v38 }
 0x46b   :  { %v917_v34 = vsel %vm914_vm3, %v916_v29, %v912_v52  ;;  %v2091_v52 = vld [vmem:[#allocation5 + $0x154] sm:$0xf]  ;;  %v1961_v29 = vld [vmem:[#allocation5 + $0x168] sm:$0xf0] }
 0x470   :  { %v2175_v54 = vpop.eup %2174 }
 0x471   :  { %v922_v41 = vsub.f32 %v2764_v17, %v2175_v54 }
 0x473   :  { %v923_v49 = vmul.f32 %v922_v41, %v917_v34  ;;  %v1964_v41 = vor.u32 %v2091_v52, %v1961_v29  ;;  %v1935_v34 = vld [vmem:[#allocation5 + $0x120] sm:$0xf]  ;;  %v1815_v52 = vld [vmem:[#allocation5 + $0x30] sm:$0xf] }
 0x475   :  { %v924_v24 = vadd.f32 %v2175_v54, %v923_v49  ;;  %v1960_v54 = vor.u32 %v2094_v57, %v1959_v51  ;;  %1413 = vmatpush.bf16.msrb.mxu3 %v1964_v41  ;;  %v2088_v49 = vld [vmem:[#allocation5 + $0x134] sm:$0xf0]  ;;  %v1817_v41 = vld [vmem:[#allocation5 + $0x48] sm:$0xf0] }
 0x477   :  { %v925_v5 = vpack.c.bf16 %v924_v24, %v924_v24  ;;  %1400 = vmatpush.bf16.msra.mxu2 %v1960_v54  ;;  %v2055_v54 = vld [vmem:[#allocation5 + $0x34] sm:$0xf] }
 0x479   :  { %934 = vmatmul.bf16.vlgmr.msrb.gmra.mxu0 %v925_v5  ;;  %947 = vmatmul.bf16.vlgmr.msra.gmra.mxu1 %v925_v5 }
 0x47a   :  { %960 = vmatmul.bf16.vlgmr.msrb.gmra.mxu2 %v925_v5  ;;  %v1936_v5 = vor.u32 %v2088_v49, %v1935_v34  ;;  %v1895_v34 = vld [vmem:[#allocation5 + $0xc8] sm:$0xf] }
 0x47c   :  { %1401 = vmatpush.bf16.msra.mxu2 %v1936_v5  ;;  %v2077_v5 = vld [vmem:[#allocation5 + $0xdc] sm:$0xf0] }
 0x4f6   :  { %v935_v6 = vpop.f32.mrf.mxu0  ;;  %v948_v53 = vpop.f32.mrf.mxu1 }
 0x4f7   :  { %v936_v35 = vadd.f32 %v935_v6, %v2573_v55  ;;  %v949_v50 = vadd.f32 %v948_v53, %v2584_v25  ;;  %v1937_v6 = vld [vmem:[#allocation5 + $0x138] sm:$0xf0] }
 0x4f9   :  { %v965_v39 = vadd.f32 %v936_v35, %v2890_v12  ;;  %v985_v18 = vadd.f32 %v949_v50, %v209_v43  ;;  %v2082_v43 = vld [vmem:[#allocation5 + $0x104] sm:$0xf0]  ;;  %v2079_v35 = vld [vmem:[#allocation5 + $0xf4] sm:$0xf]  ;;  %v1913_v12 = vld [vmem:[#allocation5 + $0x108] sm:$0xf0] }
 0x4fa   :  { %v1912_v50 = vor.u32 %v2082_v43, %v1911_v9  ;;  %v1896_v43 = vor.u32 %v2077_v5, %v1895_v34  ;;  %v1799_v34 = vld [vmem:[#allocation5 + $0x8] sm:$0xf] }
 0x4fb   :  { %v1785_v48 = vmul.f32 -1.442695, %v965_v39  ;;  %v1786_v58 = vmul.f32 -1.442695, %v985_v18  ;;  %v1916_v39 = vor.u32 %v2079_v35, %v1913_v12  ;;  %v1887_v18 = vld [vmem:[#allocation5 + $0xc0] sm:$0xf] }
 0x4fc   :  { %1402 = vmatpush.bf16.msra.mxu2 %v1912_v50  ;;  %v1791_v12 = vld [vmem:[#allocation5] sm:$0xf] }
 0x4fd   :  { %2176 = vpow2.f32 %v1785_v48  ;;  %v961_v17 = vpop.f32.mrf.mxu2  ;;  %v2076_v48 = vld [vmem:[#allocation5 + $0xd4] sm:$0xf0] }
 0x4fe   :  { %2178 = vpow2.f32 %v1786_v58  ;;  %v937_v0 = vpop.f32.mrf.mxu0  ;;  %v950_v44 = vpop.f32.mrf.mxu1  ;;  %v962_v46 = vadd.f32 %v961_v17, %v2588_v45  ;;  %v2073_v58 = vld [vmem:[#allocation5 + $0xc4] sm:$0xf]  ;;  %v1888_v17 = vor.u32 %v2076_v48, %v1887_v18  ;;  %v2893_v48 = vld [vmem:[#allocation12_spill] sm:$0xff] }
 0x4ff   :  { %v1889_v0 = vld [vmem:[#allocation5 + $0xd8] sm:$0xf0]  ;;  %v1967_v44 = vld [vmem:[#allocation5 + $0x158] sm:$0xf]  ;;  %v2049_v18 = vld [vmem:[#allocation5 + $0x4] sm:$0xf] }
 0x500   :  { %1403 = vmatpush.bf16.msra.mxu2 %v1888_v17 }
 0x503   :  { %v2177_v59 = vpop.eup %2176 }
 0x504   :  { %v2179_v3 = vpop.eup %2178  ;;  %v969_v20 = vadd.f32 1.0, %v2177_v59  ;;  %v2095_v59 = vld [vmem:[#allocation5 + $0x16c] sm:$0xf0] }
 0x505   :  { %v989_v7 = vadd.f32 1.0, %v2179_v3  ;;  %v963_v27 = vpop.f32.mrf.mxu2  ;;  %v1892_v3 = vor.u32 %v2073_v58, %v1889_v0 }
 0x506   :  { %2180 = vrcp.f32 %v969_v20  ;;  %v981_v11 = vand.u32 2147483648, %v969_v20  ;;  %v979_v23 = vand.u32 2147483647, %v969_v20  ;;  %vm975_vm5 = vweird.f32 %v969_v20  ;;  %v1969_v27 = vld [vmem:[#allocation5 + $0x170] sm:$0xf0] }
 0x507   :  { %2182 = vrcp.f32 %v989_v7  ;;  %v1001_v37 = vand.u32 2147483648, %v989_v7  ;;  %vm995_vm9 = vweird.f32 %v989_v7  ;;  %v999_v40 = vand.u32 2147483647, %v989_v7 }
 0x508   :  { %v982_v10 = vor.u32 1.1754944e-38, %v981_v11  ;;  %vm980_vm7 = vcmp.eq.f32.partialorder %v979_v23, 8.507059e+37  ;;  %v1865_v11 = vld [vmem:[#allocation5 + $0xa8] sm:$0xf0]  ;;  %v2089_v23 = vld [vmem:[#allocation5 + $0x13c] sm:$0xf0] }
 0x509   :  { %v1002_v15 = vor.u32 1.1754944e-38, %v1001_v37  ;;  %vm1000_vm11 = vcmp.eq.f32.partialorder %v999_v40, 8.507059e+37 }
 0x50c   :  { %v2181_v33 = vpop.eup %2180 }
 0x50d   :  { %v2183_v42 = vpop.eup %2182  ;;  %v971_v56 = vmul.f32 %v2181_v33, %v969_v20  ;;  %vm976_vm4 = vweird.f32 %v2181_v33  ;;  %v1968_v20 = vor.u32 %v2095_v59, %v1967_v44  ;;  %v1793_v44 = vld [vmem:[#allocation5 + $0x18] sm:$0xf0]  ;;  %v1871_v59 = vld [vmem:[#allocation5 + $0x98] sm:$0xf] }
 0x50e   :  { %v991_v14 = vmul.f32 %v2183_v42, %v989_v7  ;;  %vm977_vm6 = vmor %vm975_vm5, %vm976_vm4  ;;  %vm996_vm8 = vweird.f32 %v2183_v42  ;;  %v2092_v7 = vld [vmem:[#allocation5 + $0x15c] sm:$0xf] }
 0x50f   :  { %v972_v2 = vsub.f32 1.0, %v971_v56  ;;  %vm997_vm10 = vmor %vm995_vm9, %vm996_vm8  ;;  %1426 = vmatpush.bf16.msrb.mxu0 %v1968_v20  ;;  %v2070_v56 = vld [vmem:[#allocation5 + $0xa4] sm:$0xf0]  ;;  %v1796_v20 = vor.u32 %v2049_v18, %v1793_v44  ;;  %v1881_v44 = vld [vmem:[#allocation5 + $0xb8] sm:$0xf0] }
 0x510   :  { %v992_v36 = vsub.f32 1.0, %v991_v14 }
 0x511   :  { %v973_v21 = vmul.f32 %v2181_v33, %v972_v2  ;;  %v2067_v2 = vld [vmem:[#allocation5 + $0x94] sm:$0xf] }
 0x512   :  { %v993_v60 = vmul.f32 %v2183_v42, %v992_v36 }
 0x513   :  { %v974_v30 = vadd.f32 %v2181_v33, %v973_v21  ;;  %v1943_v21 = vld [vmem:[#allocation5 + $0x128] sm:$0xf] }
 0x514   :  { %v994_v32 = vadd.f32 %v2183_v42, %v993_v60  ;;  %v1944_v36 = vor.u32 %v2089_v23, %v1943_v21  ;;  %v2892_v60 = vld [vmem:[#allocation15_spill] sm:$0xff]  ;;  %v1977_v21 = vld [vmem:[#allocation5 + $0x178] sm:$0xf0] }
 0x515   :  { %v978_v61 = vsel %vm977_vm6, %v2181_v33, %v974_v30  ;;  %v1972_v33 = vor.u32 %v2092_v7, %v1969_v27  ;;  %v1868_v30 = vor.u32 %v2067_v2, %v1865_v11  ;;  %v2068_v7 = vld [vmem:[#allocation5 + $0x9c] sm:$0xf]  ;;  %v1873_v27 = vld [vmem:[#allocation5 + $0xb0] sm:$0xf0]  ;;  %v2096_v2 = vld [vmem:[#allocation5 + $0x174] sm:$0xf0] }
 0x516   :  { %v983_v8 = vsel %vm980_vm7, %v982_v10, %v978_v61  ;;  %v998_v13 = vsel %vm997_vm10, %v2183_v42, %v994_v32  ;;  %v1863_v42 = vld [vmem:[#allocation5 + $0x90] sm:$0xf]  ;;  %v2086_v10 = vld [vmem:[#allocation5 + $0x12c] sm:$0xf]  ;;  %1427 = vmatpush.bf16.msrb.mxu0 %v1944_v36  ;;  %v1847_v23 = vld [vmem:[#allocation5 + $0x68] sm:$0xf] }
 0x517   :  { %v1005_v22 = vmul.f32 %v983_v8, %v962_v46  ;;  %v1003_v31 = vsel %vm1000_vm11, %v1002_v15, %v998_v13  ;;  %1439 = vmatpush.bf16.msra.mxu1 %v1972_v33  ;;  %v1864_v14 = vor.u32 %v2070_v56, %v1863_v42  ;;  %v1945_v46 = vld [vmem:[#allocation5 + $0x140] sm:$0xf0]  ;;  %v1841_v13 = vld [vmem:[#allocation5 + $0x78] sm:$0xf0]  ;;  %v2083_v15 = vld [vmem:[#allocation5 + $0x10c] sm:$0xf0]  ;;  %v1876_v56 = vor.u32 %v2068_v7, %v1873_v27 }
 0x518   :  { %v1948_v61 = vor.u32 %v2086_v10, %v1945_v46  ;;  %v1975_v33 = vld [vmem:[#allocation5 + $0x160] sm:$0xf]  ;;  %v2062_v46 = vld [vmem:[#allocation5 + $0x6c] sm:$0xf]  ;;  %v2063_v7 = vld [vmem:[#allocation5 + $0x74] sm:$0xf] }
 0x519   :  { %v1006_v28 = vadd.f32 %v1005_v22, %v238_v16  ;;  %1404 = vmatpush.bf16.msra.mxu2 %v1864_v14  ;;  %v2064_v16 = vld [vmem:[#allocation5 + $0x74] sm:$0xf0]  ;;  %v2061_v22 = vld [vmem:[#allocation5 + $0x64] sm:$0xf]  ;;  %v1976_v11 = vor.u32 %v2096_v2, %v1975_v33  ;;  %v1857_v27 = vld [vmem:[#allocation5 + $0x88] sm:$0xf0] }
 0x51a   :  { %v1840_v40 = vor.u32 %v2064_v16, %v1839_v1  ;;  %v2093_v14 = vld [vmem:[#allocation5 + $0x164] sm:$0xf] }
 0x51b   :  { %2184 = vtanh.f32 %v1006_v28  ;;  %v211_v28 = vadd.f32 %v2892_v60, %v2582_v19  ;;  %1440 = vmatpush.bf16.msra.mxu1 %v1948_v61  ;;  %v2058_v19 = vld [vmem:[#allocation5 + $0x44] sm:$0xf0]  ;;  %v1980_v36 = vor.u32 %v2093_v14, %v1977_v21  ;;  %v1849_v61 = vld [vmem:[#allocation5 + $0x80] sm:$0xf0]  ;;  %v2087_v60 = vld [vmem:[#allocation5 + $0x134] sm:$0xf]  ;;  %v1860_v14 = vor.u32 %v2063_v7, %v1857_v27 }
 0x51c   :  { %v1816_v29 = vor.u32 %v2058_v19, %v1815_v52  ;;  %v1852_v16 = vor.u32 %v2062_v46, %v1849_v61  ;;  %v2060_v21 = vld [vmem:[#allocation5 + $0x54] sm:$0xf0]  ;;  %v2099_v27 = vld [vmem:[%s2880_s7 + $0x10] sm:$0xff] }
 0x51d   :  { %1405 = vmatpush.bf16.msra.mxu2 %v1840_v40  ;;  %v1953_v40 = vld [vmem:[#allocation5 + $0x148] sm:$0xf0] }
 0x521   :  { %v2185_v63 = vpop.eup %2184  ;;  %1406 = vmatpush.bf16.msra.mxu2 %v1816_v29 }
 0x522   :  { %v1008_v26 = vsub.f32 %v924_v24, %v2185_v63  ;;  %v2085_v24 = vld [vmem:[#allocation5 + $0x124] sm:$0xf] }
 0x523   :  { %v1940_v53 = vor.u32 %v2085_v24, %v1937_v6  ;;  %v1820_v24 = vor.u32 %v2055_v54, %v1817_v41  ;;  %v2074_v6 = vld [vmem:[#allocation5 + $0xcc] sm:$0xf]  ;;  %v2081_v54 = vld [vmem:[#allocation5 + $0x104] sm:$0xf] }
 0x524   :  { %v1009_v47 = vmul.f32 %v1008_v26, %v1003_v31  ;;  %v1844_v26 = vor.u32 %v2061_v22, %v1841_v13  ;;  %v2090_v22 = vld [vmem:[#allocation5 + $0x144] sm:$0xf0]  ;;  %v1823_v13 = vld [vmem:[#allocation5 + $0x38] sm:$0xf] }
 0x525   :  { %1414 = vmatpush.bf16.msrb.mxu3 %v1940_v53  ;;  %v1897_v53 = vld [vmem:[#allocation5 + $0xe0] sm:$0xf0] }
 0x526   :  { %v2793_v4 = vadd.f32 %v2185_v63, %v1009_v47  ;;  %v1919_v63 = vld [vmem:[#allocation5 + $0xf8] sm:$0xf]  ;;  %v2080_v47 = vld [vmem:[#allocation5 + $0xfc] sm:$0xf]  ;;  %v1900_v35 = vor.u32 %v2074_v6, %v1897_v53  ;;  %v1801_v6 = vld [vmem:[#allocation5 + $0x20] sm:$0xf0] }
 0x527   :  { %v1920_v31 = vor.u32 %v2083_v15, %v1919_v63  ;;  %v2059_v63 = vld [vmem:[#allocation5 + $0x4c] sm:$0xf0]  ;;  %v2056_v15 = vld [vmem:[#allocation5 + $0x3c] sm:$0xf] }
 0x528   :  { %v1011_v38 = vpack.c.bf16 %v2793_v4, %v2793_v4  ;;  %v1903_v53 = vld [vmem:[#allocation5 + $0xd0] sm:$0xf] }
 0x529   :  { %1415 = vmatpush.bf16.msrb.mxu3 %v1916_v39  ;;  %1428 = vmatpush.bf16.msrb.mxu0 %v1920_v31  ;;  %v2052_v39 = vld [vmem:[#allocation5 + $0x14] sm:$0xf0]  ;;  %v1824_v31 = vor.u32 %v2059_v63, %v1823_v13  ;;  %v1809_v13 = vld [vmem:[#allocation5 + $0x28] sm:$0xf0] }
 0x52a   :  { %1020 = vmatmul.bf16.vlgmr.msra.gmra.mxu3 %v1011_v38  ;;  %1033 = vmatmul.bf16.vlgmr.msra.gmra.mxu0 %v1011_v38  ;;  %v1792_v0 = vor.u32 %v2052_v39, %v1791_v12  ;;  %v1905_v12 = vld [vmem:[#allocation5 + $0xe8] sm:$0xf0] }
 0x52b   :  { %1046 = vmatmul.bf16.vlgmr.msrb.gmra.mxu1 %v1011_v38  ;;  %v1921_v38 = vld [vmem:[#allocation5 + $0x110] sm:$0xf0] }
 0x52c   :  { %v1924_v57 = vor.u32 %v2080_v47, %v1921_v38  ;;  %1407 = vmatpush.bf16.msra.mxu2 %v1792_v0  ;;  %v1825_v47 = vld [vmem:[#allocation5 + $0x50] sm:$0xf0]  ;;  %v1927_v38 = vld [vmem:[#allocation5 + $0x100] sm:$0xf]  ;;  %v2069_v0 = vld [vmem:[#allocation5 + $0xa4] sm:$0xf] }
 0x52d   :  { %1416 = vmatpush.bf16.msrb.mxu3 %v1892_v3  ;;  %1429 = vmatpush.bf16.msrb.mxu0 %v1896_v43  ;;  %v2071_v3 = vld [vmem:[#allocation5 + $0xac] sm:$0xf0]  ;;  %v1828_v52 = vor.u32 %v2056_v15, %v1825_v47 }
 0x52e   :  { %1441 = vmatpush.bf16.msra.mxu1 %v1924_v57  ;;  %v2894_v47 = vld [vmem:[#allocation16_spill] sm:$0xff] }
 0x530   :  { %1452 = vmatpush.bf16.msrb.mxu2 %v1976_v11  ;;  %v1831_v11 = vld [vmem:[#allocation5 + $0x40] sm:$0xf] }
 0x531   :  { %1417 = vmatpush.bf16.msrb.mxu3 %v1868_v30  ;;  %v2065_v30 = vld [vmem:[#allocation5 + $0x7c] sm:$0xf0] }
 0x532   :  { %1442 = vmatpush.bf16.msra.mxu1 %v1900_v35  ;;  %v1848_v10 = vor.u32 %v2065_v30, %v1847_v23  ;;  %v2078_v35 = vld [vmem:[#allocation5 + $0xe4] sm:$0xf0] }
 0x533   :  { %v1904_v39 = vor.u32 %v2078_v35, %v1903_v53 }
 0x535   :  { %1418 = vmatpush.bf16.msrb.mxu3 %v1844_v26  ;;  %v1956_v26 = vor.u32 %v2087_v60, %v1953_v40  ;;  %v2054_v60 = vld [vmem:[#allocation5 + $0x24] sm:$0xf0]  ;;  %v2051_v40 = vld [vmem:[#allocation5 + $0x14] sm:$0xf] }
 0x536   :  { %1443 = vmatpush.bf16.msra.mxu1 %v1876_v56 }
 0x539   :  { %1419 = vmatpush.bf16.msrb.mxu3 %v1820_v24  ;;  %v2050_v24 = vld [vmem:[#allocation5 + $0xc] sm:$0xf] }
 0x53a   :  { %1444 = vmatpush.bf16.msra.mxu1 %v1852_v16  ;;  %v1804_v43 = vor.u32 %v2050_v24, %v1801_v6 }
 0x53d   :  { %1420 = vmatpush.bf16.msrb.mxu3 %v1796_v20  ;;  %v2066_v20 = vld [vmem:[#allocation5 + $0x84] sm:$0xf0] }
 0x53e   :  { %1445 = vmatpush.bf16.msra.mxu1 %v1828_v52  ;;  %v1812_v52 = vor.u32 %v2051_v40, %v1809_v13 }
 0x541   :  { %1465 = vmatpush.bf16.msra.mxu3 %v1980_v36  ;;  %v2057_v36 = vld [vmem:[#allocation5 + $0x44] sm:$0xf] }
 0x542   :  { %1446 = vmatpush.bf16.msra.mxu1 %v1804_v43  ;;  %v2103_v43 = vld [vmem:[%s2880_s7 + $0x30] sm:$0xff] }
 0x545   :  { %1466 = vmatpush.bf16.msra.mxu3 %v1956_v26 }
 0x5a7   :  { %v1034_v8 = vpop.f32.mrf.mxu0 }
 0x5a8   :  { %v1035_v32 = vadd.f32 %v1034_v8, %v2584_v25  ;;  %v2800_v37 = vpop.f32.mrf.mxu1  ;;  %v1951_v8 = vld [vmem:[#allocation5 + $0x130] sm:$0xf] }
 0x5a9   :  { %v1048_v63 = vadd.f32 %v2800_v37, %v2588_v45 }
 0x5aa   :  { %v1071_v51 = vadd.f32 %v1035_v32, %v211_v28  ;;  %v1952_v32 = vor.u32 %v2090_v22, %v1951_v8  ;;  %v1832_v8 = vor.u32 %v2060_v21, %v1831_v11  ;;  %v1807_v22 = vld [vmem:[#allocation5 + $0x10] sm:$0xf] }
 0x5ac   :  { %v1788_v25 = vmul.f32 -1.442695, %v1071_v51  ;;  %v2084_v51 = vld [vmem:[#allocation5 + $0x114] sm:$0xf0]  ;;  %1453 = vmatpush.bf16.msrb.mxu2 %v1952_v32 }
 0x5ad   :  { %v1021_v49 = vpop.f32.mrf.mxu3  ;;  %v1928_v19 = vor.u32 %v2084_v51, %v1927_v38  ;;  %v240_v38 = vadd.f32 %v2894_v47, %v2591_v62 }
 0x5ae   :  { %v1022_v9 = vadd.f32 %v1021_v49, %v2573_v55  ;;  %2186 = vpow2.f32 %v1788_v25  ;;  %v1872_v55 = vor.u32 %v2071_v3, %v1871_v59  ;;  %v1929_v25 = vld [vmem:[#allocation5 + $0x118] sm:$0xf0]  ;;  %v2053_v49 = vld [vmem:[#allocation5 + $0x1c] sm:$0xf0]  ;;  %v1884_v59 = vor.u32 %v2069_v0, %v1881_v44  ;;  %v1855_v3 = vld [vmem:[#allocation5 + $0x70] sm:$0xf] }
 0x5af   :  { %v1036_v50 = vpop.f32.mrf.mxu0  ;;  %v1932_v41 = vor.u32 %v2081_v54, %v1929_v25  ;;  %v1856_v56 = vor.u32 %v2066_v20, %v1855_v3  ;;  %v2100_v20 = vld [vmem:[%s2880_s7 + $0x18] sm:$0xff] }
 0x5b0   :  { %v1051_v58 = vadd.f32 %v1022_v9, %v2893_v48  ;;  %v1049_v17 = vpop.f32.mrf.mxu1  ;;  %1430 = vmatpush.bf16.msrb.mxu0 %v1872_v55  ;;  %v1800_v9 = vor.u32 %v2053_v49, %v1799_v34  ;;  %v2075_v50 = vld [vmem:[#allocation5 + $0xd4] sm:$0xf]  ;;  %1454 = vmatpush.bf16.msrb.mxu2 %v1928_v19  ;;  %v1879_v48 = vld [vmem:[#allocation5 + $0xa0] sm:$0xf] }
 0x5b1   :  { %1467 = vmatpush.bf16.msra.mxu3 %v1932_v41  ;;  %v1908_v18 = vor.u32 %v2075_v50, %v1905_v12  ;;  %v2102_v12 = vld [vmem:[%s2880_s7 + $0x28] sm:$0xff] }
 0x5b2   :  { %v1787_v42 = vmul.f32 -1.442695, %v1051_v58  ;;  %v2072_v58 = vld [vmem:[#allocation5 + $0xb4] sm:$0xf0] }
 0x5b3   :  { %v1880_v17 = vor.u32 %v2072_v58, %v1879_v48 }
 0x5b4   :  { %2188 = vpow2.f32 %v1787_v42  ;;  %v2187_v28 = vpop.eup %2186  ;;  %1431 = vmatpush.bf16.msrb.mxu0 %v1848_v10  ;;  %1455 = vmatpush.bf16.msrb.mxu2 %v1904_v39  ;;  %v1833_v10 = vld [vmem:[#allocation5 + $0x58] sm:$0xf0] }
 0x5b5   :  { %v1023_v1 = vpop.f32.mrf.mxu3  ;;  %v2804_v57 = vadd.f32 1.0, %v2187_v28  ;;  %1468 = vmatpush.bf16.msra.mxu3 %v1908_v18  ;;  %v1836_v16 = vor.u32 %v2057_v36, %v1833_v10  ;;  %v2097_v36 = vld [vmem:[%s2880_s7] sm:$0xff] }
 0x5b7   :  { %v1087_v45 = vand.u32 2147483648, %v2804_v57  ;;  %vm1081_vm2 = vweird.f32 %v2804_v57  ;;  %v1085_v37 = vand.u32 2147483647, %v2804_v57 }
 0x5b8   :  { %1432 = vmatpush.bf16.msrb.mxu0 %v1824_v31  ;;  %1456 = vmatpush.bf16.msrb.mxu2 %v1880_v17  ;;  %v1808_v31 = vor.u32 %v2054_v60, %v1807_v22 }
 0x5b9   :  { %1469 = vmatpush.bf16.msra.mxu3 %v1884_v59  ;;  %v1088_v62 = vor.u32 1.1754944e-38, %v1087_v45  ;;  %vm1086_vm4 = vcmp.eq.f32.partialorder %v1085_v37, 8.507059e+37  ;;  %v2101_v59 = vld [vmem:[%s2880_s7 + $0x20] sm:$0xff] }
 0x5ba   :  { %v2189_v29 = vpop.eup %2188 }
 0x5bb   :  { %v2806_v5 = vadd.f32 1.0, %v2189_v29 }
 0x5bc   :  { %1433 = vmatpush.bf16.msrb.mxu0 %v1800_v9  ;;  %1457 = vmatpush.bf16.msrb.mxu2 %v1856_v56 }
 0x5bd   :  { %2190 = vrcp.f32 %v2806_v5  ;;  %v1067_v30 = vand.u32 2147483648, %v2806_v5  ;;  %v1065_v61 = vand.u32 2147483647, %v2806_v5  ;;  %vm1061_vm13 = vweird.f32 %v2806_v5  ;;  %1470 = vmatpush.bf16.msra.mxu3 %v1860_v14 }
 0x5be   :  { %2192 = vrcp.f32 %v2804_v57 }
 0x5bf   :  { %v1068_v32 = vor.u32 1.1754944e-38, %v1067_v30  ;;  %vm1066_vm15 = vcmp.eq.f32.partialorder %v1065_v61, 8.507059e+37 }
 0x5c0   :  { %1458 = vmatpush.bf16.msrb.mxu2 %v1832_v8 }
 0x5c1   :  { %1471 = vmatpush.bf16.msra.mxu3 %v1836_v16 }
 0x5c3   :  { %v2191_v55 = vpop.eup %2190 }
 0x5c4   :  { %v2193_v33 = vpop.eup %2192  ;;  %v1057_v42 = vmul.f32 %v2191_v55, %v2806_v5  ;;  %vm1062_vm12 = vweird.f32 %v2191_v55  ;;  %1459 = vmatpush.bf16.msrb.mxu2 %v1808_v31 }
 0x5c5   :  { %v1077_v23 = vmul.f32 %v2193_v33, %v2804_v57  ;;  %vm1063_vm14 = vmor %vm1061_vm13, %vm1062_vm12  ;;  %1472 = vmatpush.bf16.msra.mxu3 %v1812_v52  ;;  %vm1082_vm1 = vweird.f32 %v2193_v33  ;;  %v2104_v57 = vld [vmem:[%s2880_s7 + $0x38] sm:$0xff] }
 0x5c6   :  { %v1058_v2 = vsub.f32 1.0, %v1057_v42  ;;  %vm1083_vm3 = vmor %vm1081_vm2, %vm1082_vm1  ;;  %1593 = vmatpush.bf16.msra.mxu0 %v2104_v57 }
 0x5c7   :  { %v1078_v28 = vsub.f32 1.0, %v1077_v23 }
 0x5c8   :  { %v1059_v46 = vmul.f32 %v2191_v55, %v1058_v2  ;;  %v2098_v2 = vld [vmem:[%s2880_s7 + $0x8] sm:$0xff] }
 0x5c9   :  { %v1079_v19 = vmul.f32 %v2193_v33, %v1078_v28 }
 0x5ca   :  { %v1060_v1 = vadd.f32 %v2191_v55, %v1059_v46  ;;  %1594 = vmatpush.bf16.msra.mxu0 %v2103_v43 }
 0x5cb   :  { %v1080_v25 = vadd.f32 %v2193_v33, %v1079_v19 }
 0x5cc   :  { %v1064_v15 = vsel %vm1063_vm14, %v2191_v55, %v1060_v1 }
 0x5cd   :  { %v1069_v26 = vsel %vm1066_vm15, %v1068_v32, %v1064_v15  ;;  %v1084_v29 = vsel %vm1083_vm3, %v2193_v33, %v1080_v25 }
 0x5ce   :  { %v1091_v51 = vmul.f32 %v1069_v26, %v1048_v63  ;;  %v1089_v49 = vsel %vm1086_vm4, %v1088_v62, %v1084_v29  ;;  %1595 = vmatpush.bf16.msra.mxu0 %v2102_v12 }
 0x5d0   :  { %v1092_v54 = vadd.f32 %v1091_v51, %v240_v38 }
 0x5d2   :  { %2194 = vtanh.f32 %v1092_v54  ;;  %1596 = vmatpush.bf16.msra.mxu0 %v2101_v59 }
 0x5d6   :  { %1597 = vmatpush.bf16.msra.mxu0 %v2100_v20 }
 0x5d8   :  { %v2195_v41 = vpop.eup %2194 }
 0x5d9   :  { %v1094_v34 = vsub.f32 %v2793_v4, %v2195_v41  ;;  %v2833_v4 = vld [vmem:[%s2879_s6] sm:$0x3f] }
 0x5da   :  { %v1151_v35 = vperm.slane %v2833_v4, 3  ;;  %v1148_v50 = vperm.slane %v2833_v4, 0  ;;  %v1149_v42 = vperm.slane %v2833_v4, 1  ;;  %v1152_v56 = vperm.slane %v2833_v4, 4  ;;  %1598 = vmatpush.bf16.msra.mxu0 %v2099_v27 }
 0x5db   :  { %v1095_v24 = vmul.f32 %v1094_v34, %v1089_v49  ;;  %v1153_v28 = vperm.slane %v2833_v4, 5  ;;  %v1150_v63 = vperm.slane %v2833_v4, 2 }
 0x5dd   :  { %v2823_v5 = vadd.f32 %v2195_v41, %v1095_v24 }
 0x5de   :  { %1599 = vmatpush.bf16.msra.mxu0 %v2098_v2 }
 0x5df   :  { %v1097_v6 = vpack.c.bf16 %v2823_v5, %v2823_v5 }
 0x5e1   :  { %1408 = vmatmul.bf16.vlgmr.msra.gmra.mxu2 %v1097_v6  ;;  %1421 = vmatmul.bf16.vlgmr.msrb.gmra.mxu3 %v1097_v6 }
 0x5e2   :  { %1434 = vmatmul.bf16.vlgmr.msrb.gmra.mxu0 %v1097_v6  ;;  %1447 = vmatmul.bf16.vlgmr.msra.gmra.mxu1 %v1097_v6 }
 0x5e3   :  { %1600 = vmatpush.bf16.msra.mxu0 %v2097_v36 }
 0x5f1   :  { %1460 = vmatmul.bf16.vlgmr.msrb.gmra.mxu2 %v1097_v6  ;;  %1473 = vmatmul.bf16.vlgmr.msra.gmra.mxu3 %v1097_v6 }
 0x65f   :  { %v2835_v53 = vpop.f32.mrf.mxu0  ;;  %v1448_v9 = vpop.f32.mrf.mxu1 }
 0x660   :  { %v1449_v48 = vadd.f32 %v1448_v9, %v1151_v35  ;;  %v1436_v52 = vadd.f32 %v2835_v53, %v1150_v63  ;;  %v2115_v35 = vld [vmem:[%s2881_s8] ss:$0 sm:$0xff] }
 0x664   :  { %v1409_v39 = vpop.f32.mrf.mxu2  ;;  %v1422_v18 = vpop.f32.mrf.mxu3 }
 0x665   :  { %v1410_v58 = vadd.f32 %v1409_v39, %v1148_v50  ;;  %v1423_v23 = vadd.f32 %v1422_v18, %v1149_v42 }
 0x667   :  { %v1478_v17 = vadd.f32 %v1449_v48, %v1410_v58  ;;  %v1437_v0 = vpop.f32.mrf.mxu0  ;;  %v1450_v44 = vpop.f32.mrf.mxu1 }
 0x669   :  { %v1981_v3 = vmul.f32 -1.442695, %v1478_v17 }
 0x66b   :  { %2196 = vpow2.f32 %v1981_v3 }
 0x66c   :  { %v1411_v55 = vpop.f32.mrf.mxu2  ;;  %v1424_v7 = vpop.f32.mrf.mxu3 }
 0x671   :  { %v2197_v33 = vpop.eup %2196 }
 0x672   :  { %v1482_v14 = vadd.f32 1.0, %v2197_v33 }
 0x674   :  { %2198 = vrcp.f32 %v1482_v14  ;;  %v1461_v11 = vpop.f32.mrf.mxu2  ;;  %v1474_v21 = vpop.f32.mrf.mxu3  ;;  %v1494_v60 = vand.u32 2147483648, %v1482_v14  ;;  %v1492_v40 = vand.u32 2147483647, %v1482_v14  ;;  %vm1488_vm6 = vweird.f32 %v1482_v14 }
 0x675   :  { %v1462_v30 = vadd.f32 %v1461_v11, %v1152_v56  ;;  %v1475_v47 = vadd.f32 %v1474_v21, %v1153_v28 }
 0x676   :  { %v1495_v31 = vor.u32 1.1754944e-38, %v1494_v60  ;;  %vm1493_vm8 = vcmp.eq.f32.partialorder %v1492_v40, 8.507059e+37 }
 0x677   :  { %v1498_v10 = vadd.f32 %v1462_v30, %v1423_v23 }
 0x679   :  { %v1982_v46 = vmul.f32 -1.442695, %v1498_v10 }
 0x67a   :  { %v2199_v61 = vpop.eup %2198 }
 0x67b   :  { %2200 = vpow2.f32 %v1982_v46  ;;  %v1484_v8 = vmul.f32 %v2199_v61, %v1482_v14  ;;  %vm1489_vm5 = vweird.f32 %v2199_v61 }
 0x67c   :  { %v1463_v1 = vpop.f32.mrf.mxu2  ;;  %v1476_v16 = vpop.f32.mrf.mxu3  ;;  %vm1490_vm7 = vmor %vm1488_vm6, %vm1489_vm5 }
 0x67d   :  { %v1485_v22 = vsub.f32 1.0, %v1484_v8 }
 0x67f   :  { %v1486_v32 = vmul.f32 %v2199_v61, %v1485_v22 }
 0x681   :  { %v2201_v13 = vpop.eup %2200  ;;  %v1487_v15 = vadd.f32 %v2199_v61, %v1486_v32 }
 0x682   :  { %v1502_v26 = vadd.f32 1.0, %v2201_v13 }
 0x683   :  { %v1491_v38 = vsel %vm1490_vm7, %v2199_v61, %v1487_v15 }
 0x684   :  { %2202 = vrcp.f32 %v1502_v26  ;;  %v1496_v51 = vsel %vm1493_vm8, %v1495_v31, %v1491_v38  ;;  %v1514_v29 = vand.u32 2147483648, %v1502_v26  ;;  %v1512_v62 = vand.u32 2147483647, %v1502_v26 }
 0x685   :  { %v1518_v19 = vmul.f32 %v1496_v51, %v1475_v47  ;;  %vm1508_vm10 = vweird.f32 %v1502_v26 }
 0x686   :  { %v1515_v24 = vor.u32 1.1754944e-38, %v1514_v29  ;;  %vm1513_vm12 = vcmp.eq.f32.partialorder %v1512_v62, 8.507059e+37 }
 0x687   :  { %v1519_v54 = vadd.f32 %v1518_v19, %v1436_v52 }
 0x689   :  { %2204 = vtanh.f32 %v1519_v54 }
 0x68a   :  { %v2203_v25 = vpop.eup %2202 }
 0x68b   :  { %v1504_v45 = vmul.f32 %v2203_v25, %v1502_v26  ;;  %vm1509_vm9 = vweird.f32 %v2203_v25 }
 0x68c   :  { %vm1510_vm11 = vmor %vm1508_vm10, %vm1509_vm9 }
 0x68d   :  { %v1505_v37 = vsub.f32 1.0, %v1504_v45 }
 0x68f   :  { %v1506_v41 = vmul.f32 %v2203_v25, %v1505_v37  ;;  %v2205_v34 = vpop.eup %2204 }
 0x690   :  { %v1521_v57 = vsub.f32 %v2823_v5, %v2205_v34 }
 0x691   :  { %v1507_v49 = vadd.f32 %v2203_v25, %v1506_v41 }
 0x693   :  { %v1511_v6 = vsel %vm1510_vm11, %v2203_v25, %v1507_v49 }
 0x694   :  { %v1516_v4 = vsel %vm1513_vm12, %v1515_v24, %v1511_v6 }
 0x695   :  { %v1522_v53 = vmul.f32 %v1521_v57, %v1516_v4 }
 0x697   :  { %v1523_v9 = vadd.f32 %v2205_v34, %v1522_v53 }
 0x699   :  { %v1524_v43 = vpack.c.bf16 %v1523_v9, %v1523_v9 }
 0x69b   :  { %1601 = vmatmul.bf16.vlgmr.msra.gmra.mxu0 %v1524_v43 }
 0x718   :  { %v1602_v50 = vpop.f32.mrf.mxu0 }
 0x719   :  { %v1603_v12 = vadd.f32 %v2115_v35, %v1602_v50 }
 0x71b   :  { %1606 = vst.msk [vmem:[#allocation7] sm:$0xff] %vm142_vm0, %v1603_v12 }
 0x71c   :  { %1617 = dma.vmem_to_hbm [thread:$0]  %s1613_s26, 128, %s1615_s28, [#allocation4]  }
 0x720   :  { %v1604_v5 = vpop.f32.mrf.mxu0 }
 0x721   :  { %2282 = dma.done.wait [#allocation4], 128  }
 0x722   :  { %2283 = vsyncadd [#allocation4], 4294967168 }
 0x723   :  { %1622 = vsyncpa [#allocation3], 1 }
 0x724   :  { %1623 = vsyncpa [#allocation6], 1 }
 0x725   :  { %1624 = vsyncpa [#allocation4], 1 }

</bundles_post_ra>
